<compile_context>
chip_gen: v5e
topology: v5e:2x2
jax: 0.10.0
libtpu: 0.0.40
codegen_flags: <defaults>
</compile_context>

<pallas_src>
import math

import jax
import jax.numpy as jnp
from jax import lax
from jax.experimental import pallas as pl
from jax.experimental.pallas import tpu as pltpu


# --------------------------------------------------------------------------
# Kernel (per batch): projection + scaled similarity + dual softmax + mutual
# match mask.
# --------------------------------------------------------------------------
def _matching_kernel(w_ref, src_ref, tgt_ref, smask_ref, tmask_ref,
                     conf_ref, match_ref, srcf_ref, tgtf_ref,
                     *, temperature, threshold):
    S, C = src_ref.shape
    T, _ = tgt_ref.shape

    w_t = w_ref[...]                                   # [C, C] == W.T (pre-transposed)

    # ---- projection: two matmuls sharing the same resident RHS (no concat) ----
    src_p = jnp.dot(src_ref[...], w_t, preferred_element_type=jnp.float32)  # [S,C]
    tgt_p = jnp.dot(tgt_ref[...], w_t, preferred_element_type=jnp.float32)  # [T,C]

    # data['src_feats'] / data['tgt_feats'] (entangled path: no PE added)
    srcf_ref[...] = src_p.astype(srcf_ref.dtype)
    tgtf_ref[...] = tgt_p.astype(tgtf_ref.dtype)

    # ---- similarity; all scale factors folded into one multiply ----
    # (src/sqrt(C)).(tgt/sqrt(C))/temperature == (src.tgt) / (C*temperature)
    scale = 1.0 / (float(C) * float(temperature))
    # bf16 operands, f32 accumulation (accuracy tradeoff vs f32 reference).
    sim = lax.dot_general(src_p.astype(jnp.bfloat16), tgt_p.astype(jnp.bfloat16),
                          (((1,), (1,)), ((), ())),
                          preferred_element_type=jnp.float32) * scale       # [S,T]

    smask = smask_ref[...] > 0.5                       # [S, 1] sublane-resident
    tmask = tmask_ref[...] > 0.5                       # [1, T] lane-resident
    neg_inf = jnp.float32(-jnp.inf)

    ones_s = jnp.ones((1, S), dtype=jnp.float32)       # MXU sum helpers
    ones_t = jnp.ones((T, 1), dtype=jnp.float32)

    # -- path 2 first (softmax over T), so its temporaries retire early --
    sim2 = jnp.where(tmask, sim, neg_inf)
    m2 = jnp.max(sim2, axis=1, keepdims=True)          # [S,1]  (XLU lane reduce)
    e2 = jnp.exp(sim2 - m2)
    sum2 = jnp.dot(e2, ones_t, preferred_element_type=jnp.float32)   # [S,1] on MXU
    p2 = e2 * pl.reciprocal(sum2, approx=True)

    # -- path 1 (softmax over S) --
    sim1 = jnp.where(smask, sim, neg_inf)
    m1 = jnp.max(sim1, axis=0, keepdims=True)          # [1,T]  (XLU sublane reduce)
    e1 = jnp.exp(sim1 - m1)
    sum1 = jnp.dot(ones_s, e1, preferred_element_type=jnp.float32)   # [1,T] on MXU
    p1 = e1 * pl.reciprocal(sum1, approx=True)

    conf = p1 * p2                                     # [S, T]

    # get_match (mutual=True): threshold + mutual row/col argmax (by equality)
    row_max = jnp.max(conf, axis=1, keepdims=True)     # max over T  -> [S,1]
    col_max = jnp.max(conf, axis=0, keepdims=True)     # max over S  -> [1,T]
    match = (conf > threshold) & (conf == row_max) & (conf == col_max)

    conf_ref[...] = conf
    match_ref[...] = match.astype(jnp.int8)


# --------------------------------------------------------------------------
# Wrapper
# --------------------------------------------------------------------------
def matching_forward(src_feats, tgt_feats, src_mask, tgt_mask, weight,
                     *, temperature, threshold):
    """Dual-softmax matching.

    src_feats: [B, S, C] f32, tgt_feats: [B, T, C] f32
    src_mask:  [B, S] (0/1), tgt_mask: [B, T] (0/1)
    weight:    [C, C] f32 (nn.Linear, out x in, no bias)
    Returns (conf_matrix [B,S,T] f32, match_mask [B,S,T] bool,
             src_feats_proj [B,S,C], tgt_feats_proj [B,T,C]).
    """
    B, S, C = src_feats.shape
    _, T, _ = tgt_feats.shape

    # Pre-transposed weight (free / constant-foldable): kernel then does x @ W.T
    # as a plain NN contraction with no in-kernel transposes.
    weight_t = weight.T

    # masks pre-shaped so in-kernel broadcasting is layout-natural
    src_mask3 = src_mask.reshape(B, S, 1).astype(jnp.float32)
    tgt_mask3 = tgt_mask.reshape(B, 1, T).astype(jnp.float32)

    kernel = lambda *refs: _matching_kernel(
        *refs, temperature=float(temperature), threshold=float(threshold))

    out_shapes = (
        jax.ShapeDtypeStruct((B, S, T), jnp.float32),   # conf_matrix
        jax.ShapeDtypeStruct((B, S, T), jnp.int8),      # mutual-match mask (0/1)
        jax.ShapeDtypeStruct((B, S, C), jnp.float32),   # data['src_feats']
        jax.ShapeDtypeStruct((B, T, C), jnp.float32),   # data['tgt_feats']
    )

    grid_spec = pltpu.PrefetchScalarGridSpec(
        num_scalar_prefetch=0,
        grid=(B,),    # one batch per step; both TCs on v7x, cheap loop elsewhere
        in_specs=[
            pl.BlockSpec((C, C), lambda b: (0, 0)),          # weight: VMEM-resident
            pl.BlockSpec((None, S, C), lambda b: (b, 0, 0)),
            pl.BlockSpec((None, T, C), lambda b: (b, 0, 0)),
            pl.BlockSpec((None, S, 1), lambda b: (b, 0, 0)),
            pl.BlockSpec((None, 1, T), lambda b: (b, 0, 0)),
        ],
        out_specs=[
            pl.BlockSpec((None, S, T), lambda b: (b, 0, 0)),
            pl.BlockSpec((None, S, T), lambda b: (b, 0, 0)),
            pl.BlockSpec((None, S, C), lambda b: (b, 0, 0)),
            pl.BlockSpec((None, T, C), lambda b: (b, 0, 0)),
        ],
    )

    # Advisory cost hint so XLA can overlap this few-microsecond custom call.
    flops = 2 * B * ((S + T) * C * C + S * T * C + 2 * S * T)
    transcendentals = 2 * B * S * T
    bytes_accessed = 4 * (C * C + B * S * C + B * T * C            # inputs
                          + B * S + B * T                          # masks
                          + B * S * T + B * S * C + B * T * C) \
                     + B * S * T                                   # int8 mask out
    cost = pl.CostEstimate(flops=flops, transcendentals=transcendentals,
                           bytes_accessed=bytes_accessed)

    conf_matrix, match_i8, src_proj, tgt_proj = pl.pallas_call(
        kernel,
        out_shape=out_shapes,
        grid_spec=grid_spec,
        compiler_params=pltpu.CompilerParams(
            dimension_semantics=("parallel",)),
        cost_estimate=cost,
    )(weight_t, src_feats, tgt_feats, src_mask3, tgt_mask3)

    match_mask = match_i8 != 0
    return conf_matrix, match_mask, src_proj, tgt_proj


if __name__ == "__main__":
    # dual_softmax branch; entangled=True so the external VolPE PE embedding
    # is skipped (matches the `if not self.entangled` guard in the reference).
    config = dict(
        match_type="dual_softmax",
        confidence_threshold=0.05,
        feature_dim=128,
        entangled=True,
        dsmax_temperature=0.1,
    )

    B, S, T, C = 2, 128, 128, config["feature_dim"]

    key = jax.random.PRNGKey(0)
    k_w, k_s, k_t = jax.random.split(key, 3)
    weight = (jax.random.normal(k_w, (C, C), dtype=jnp.float32)
              * (1.0 / math.sqrt(C)))
    src_feats = jax.random.normal(k_s, (B, S, C), dtype=jnp.float32)
    tgt_feats = jax.random.normal(k_t, (B, T, C), dtype=jnp.float32)

    # masks: first batch fully valid, second batch partially masked
    src_mask = jnp.ones((B, S), dtype=jnp.float32).at[1, S - 8:].set(0.0)
    tgt_mask = jnp.ones((B, T), dtype=jnp.float32).at[1, T - 16:].set(0.0)

    conf_matrix, match_mask, src_proj, tgt_proj = matching_forward(
        src_feats, tgt_feats, src_mask, tgt_mask, weight,
        temperature=config["dsmax_temperature"],
        threshold=config["confidence_threshold"],
    )
    jax.block_until_ready((conf_matrix, match_mask, src_proj, tgt_proj))

    # emulate get_match's nonzero()/gather on host (dynamic-shaped)
    coarse_match = jnp.argwhere(match_mask)                   # [K, 3]
    mconf = conf_matrix[coarse_match[:, 0],
                        coarse_match[:, 1],
                        coarse_match[:, 2]]
    jax.block_until_ready((coarse_match, mconf))

    print("KERNEL_OK")
</pallas_src>

<mosaic_0001>
module attributes {stable_mosaic.version = 11 : i64} {
  func.func @_lambda_(%arg0: i32, %arg1: memref<128x128xf32, #tpu.memory_space<vmem>>, %arg2: memref<1x128x128xf32, #tpu.memory_space<vmem>>, %arg3: memref<1x128x128xf32, #tpu.memory_space<vmem>>, %arg4: memref<1x128x1xf32, #tpu.memory_space<vmem>>, %arg5: memref<1x1x128xf32, #tpu.memory_space<vmem>>, %arg6: memref<1x128x128xf32, #tpu.memory_space<vmem>>, %arg7: memref<1x128x128xi8, #tpu.memory_space<vmem>>, %arg8: memref<1x128x128xf32, #tpu.memory_space<vmem>>, %arg9: memref<1x128x128xf32, #tpu.memory_space<vmem>>) attributes {dimension_semantics = [#tpu.dimension_semantics<parallel>], iteration_bounds = array<i64: 2>, scalar_prefetch = 0 : i64, scratch_operands = 0 : i64, tpu.core_type = #tpu.core_type<tc>, window_params = [{pipeline_mode = #tpu.pipeline_mode<synchronous>, transform_indices = @transform_0, window_bounds = array<i64: 128, 128>}, {transform_indices = @transform_1, window_bounds = array<i64: 1, 128, 128>}, {transform_indices = @transform_2, window_bounds = array<i64: 1, 128, 128>}, {transform_indices = @transform_3, window_bounds = array<i64: 1, 128, 1>}, {transform_indices = @transform_4, window_bounds = array<i64: 1, 1, 128>}, {transform_indices = @transform_5, window_bounds = array<i64: 1, 128, 128>}, {transform_indices = @transform_6, window_bounds = array<i64: 1, 128, 128>}, {transform_indices = @transform_7, window_bounds = array<i64: 1, 128, 128>}, {transform_indices = @transform_8, window_bounds = array<i64: 1, 128, 128>}]} {
    %c0 = arith.constant 0 : index
    %c0_0 = arith.constant 0 : index
    %0 = vector.load %arg1[%c0, %c0_0] : memref<128x128xf32, #tpu.memory_space<vmem>>, vector<128x128xf32>
    %c0_1 = arith.constant 0 : index
    %c0_2 = arith.constant 0 : index
    %c0_3 = arith.constant 0 : index
    %1 = vector.load %arg2[%c0_1, %c0_2, %c0_3] : memref<1x128x128xf32, #tpu.memory_space<vmem>>, vector<1x128x128xf32>
    %2 = vector.shape_cast %1 : vector<1x128x128xf32> to vector<128x128xf32>
    %cst = arith.constant dense<0.000000e+00> : vector<128x128xf32>
    %3 = tpu.matmul %2, %0, %cst {dimension_numbers = #tpu.dot_dimension_numbers<[1], [0], [0], [1], [0, 0, 1, 1], [], []>} : vector<128x128xf32>, vector<128x128xf32>, vector<128x128xf32> -> vector<128x128xf32>
    %c0_4 = arith.constant 0 : index
    %c0_5 = arith.constant 0 : index
    %c0_6 = arith.constant 0 : index
    %4 = vector.load %arg3[%c0_4, %c0_5, %c0_6] : memref<1x128x128xf32, #tpu.memory_space<vmem>>, vector<1x128x128xf32>
    %5 = vector.shape_cast %4 : vector<1x128x128xf32> to vector<128x128xf32>
    %cst_7 = arith.constant dense<0.000000e+00> : vector<128x128xf32>
    %6 = tpu.matmul %5, %0, %cst_7 {dimension_numbers = #tpu.dot_dimension_numbers<[1], [0], [0], [1], [0, 0, 1, 1], [], []>} : vector<128x128xf32>, vector<128x128xf32>, vector<128x128xf32> -> vector<128x128xf32>
    %c0_8 = arith.constant 0 : index
    %c0_9 = arith.constant 0 : index
    %c0_10 = arith.constant 0 : index
    %7 = vector.load %arg8[%c0_8, %c0_9, %c0_10] : memref<1x128x128xf32, #tpu.memory_space<vmem>>, vector<1x128x128xf32>
    %8 = vector.shape_cast %7 : vector<1x128x128xf32> to vector<128x128xf32>
    %9 = vector.shape_cast %3 : vector<128x128xf32> to vector<1x128x128xf32>
    tpu.vector_store %arg8[%c0_8, %c0_9, %c0_10], %9 {strides = array<i32>} : memref<1x128x128xf32, #tpu.memory_space<vmem>>, vector<1x128x128xf32>,
    %c0_11 = arith.constant 0 : index
    %c0_12 = arith.constant 0 : index
    %c0_13 = arith.constant 0 : index
    %10 = vector.load %arg9[%c0_11, %c0_12, %c0_13] : memref<1x128x128xf32, #tpu.memory_space<vmem>>, vector<1x128x128xf32>
    %11 = vector.shape_cast %10 : vector<1x128x128xf32> to vector<128x128xf32>
    %12 = vector.shape_cast %6 : vector<128x128xf32> to vector<1x128x128xf32>
    tpu.vector_store %arg9[%c0_11, %c0_12, %c0_13], %12 {strides = array<i32>} : memref<1x128x128xf32, #tpu.memory_space<vmem>>, vector<1x128x128xf32>,
    %13 = arith.truncf %3 : vector<128x128xf32> to vector<128x128xbf16>
    %14 = arith.truncf %6 : vector<128x128xf32> to vector<128x128xbf16>
    %cst_14 = arith.constant dense<0.000000e+00> : vector<128x128xf32>
    %15 = tpu.matmul %13, %14, %cst_14 {dimension_numbers = #tpu.dot_dimension_numbers<[1], [1], [0], [0], [0, 0, 1, 0], [], []>} : vector<128x128xbf16>, vector<128x128xbf16>, vector<128x128xf32> -> vector<128x128xf32>
    %cst_15 = arith.constant 7.812500e-02 : f32
    %16 = vector.broadcast %cst_15 : f32 to vector<128x128xf32>
    %17 = arith.mulf %15, %16 : vector<128x128xf32>
    %c0_16 = arith.constant 0 : index
    %c0_17 = arith.constant 0 : index
    %c0_18 = arith.constant 0 : index
    %18 = vector.load %arg4[%c0_16, %c0_17, %c0_18] : memref<1x128x1xf32, #tpu.memory_space<vmem>>, vector<1x128x1xf32>
    %19 = vector.shape_cast %18 : vector<1x128x1xf32> to vector<128x1xf32>
    %cst_19 = arith.constant 5.000000e-01 : f32
    %20 = vector.broadcast %cst_19 : f32 to vector<128x1xf32>
    %21 = arith.cmpf ogt, %19, %20 : vector<128x1xf32>
    %c0_20 = arith.constant 0 : index
    %c0_21 = arith.constant 0 : index
    %c0_22 = arith.constant 0 : index
    %22 = vector.load %arg5[%c0_20, %c0_21, %c0_22] : memref<1x1x128xf32, #tpu.memory_space<vmem>>, vector<1x1x128xf32>
    %23 = vector.shape_cast %22 : vector<1x1x128xf32> to vector<1x128xf32>
    %cst_23 = arith.constant 5.000000e-01 : f32
    %24 = vector.broadcast %cst_23 : f32 to vector<1x128xf32>
    %25 = arith.cmpf ogt, %23, %24 : vector<1x128xf32>
    %cst_24 = arith.constant 1.000000e+00 : f32
    %26 = vector.broadcast %cst_24 : f32 to vector<1x128xf32>
    %cst_25 = arith.constant 1.000000e+00 : f32
    %27 = vector.broadcast %cst_25 : f32 to vector<128x1xf32>
    %cst_26 = arith.constant 0xFF800000 : f32
    %28 = vector.shape_cast %25 : vector<1x128xi1> to vector<1x128xi1>
    %29 = vector.broadcast %28 : vector<1x128xi1> to vector<128x128xi1>
    %30 = vector.broadcast %cst_26 : f32 to vector<128x128xf32>
    %31 = arith.select %29, %17, %30 : vector<128x128xi1>, vector<128x128xf32>
    %cst_27 = arith.constant dense<0xFF800000> : vector<128xf32>
    %32 = vector.multi_reduction <maximumf>, %31, %cst_27 [1] : vector<128x128xf32> to vector<128xf32>
    %33 = vector.shape_cast %32 : vector<128xf32> to vector<128x1xf32>
    %34 = vector.broadcast %33 : vector<128x1xf32> to vector<128x128xf32>
    %35 = arith.subf %31, %34 : vector<128x128xf32>
    %36 = math.exp %35 : vector<128x128xf32>
    %cst_28 = arith.constant dense<0.000000e+00> : vector<128x1xf32>
    %37 = tpu.matmul %36, %27, %cst_28 {dimension_numbers = #tpu.dot_dimension_numbers<[1], [0], [0], [1], [0, 0, 1, 1], [], []>} : vector<128x128xf32>, vector<128x1xf32>, vector<128x1xf32> -> vector<128x1xf32>
    %38 = tpu.reciprocal %37 {approx = true} : vector<128x1xf32> -> vector<128x1xf32>
    %39 = vector.broadcast %38 : vector<128x1xf32> to vector<128x128xf32>
    %40 = arith.mulf %36, %39 : vector<128x128xf32>
    %cst_29 = arith.constant 0xFF800000 : f32
    %41 = vector.shape_cast %21 : vector<128x1xi1> to vector<128x1xi1>
    %42 = vector.broadcast %41 : vector<128x1xi1> to vector<128x128xi1>
    %43 = vector.broadcast %cst_29 : f32 to vector<128x128xf32>
    %44 = arith.select %42, %17, %43 : vector<128x128xi1>, vector<128x128xf32>
    %cst_30 = arith.constant dense<0xFF800000> : vector<128xf32>
    %45 = vector.multi_reduction <maximumf>, %44, %cst_30 [0] : vector<128x128xf32> to vector<128xf32>
    %46 = vector.shape_cast %45 : vector<128xf32> to vector<1x128xf32>
    %47 = vector.broadcast %46 : vector<1x128xf32> to vector<128x128xf32>
    %48 = arith.subf %44, %47 : vector<128x128xf32>
    %49 = math.exp %48 : vector<128x128xf32>
    %cst_31 = arith.constant dense<0.000000e+00> : vector<1x128xf32>
    %50 = tpu.matmul %26, %49, %cst_31 {dimension_numbers = #tpu.dot_dimension_numbers<[1], [0], [0], [1], [0, 0, 1, 1], [], []>} : vector<1x128xf32>, vector<128x128xf32>, vector<1x128xf32> -> vector<1x128xf32>
    %51 = tpu.reciprocal %50 {approx = true} : vector<1x128xf32> -> vector<1x128xf32>
    %52 = vector.broadcast %51 : vector<1x128xf32> to vector<128x128xf32>
    %53 = arith.mulf %49, %52 : vector<128x128xf32>
    %54 = arith.mulf %53, %40 : vector<128x128xf32>
    %cst_32 = arith.constant dense<0xFF800000> : vector<128xf32>
    %55 = vector.multi_reduction <maximumf>, %54, %cst_32 [1] : vector<128x128xf32> to vector<128xf32>
    %56 = vector.shape_cast %55 : vector<128xf32> to vector<128x1xf32>
    %cst_33 = arith.constant dense<0xFF800000> : vector<128xf32>
    %57 = vector.multi_reduction <maximumf>, %54, %cst_33 [0] : vector<128x128xf32> to vector<128xf32>
    %58 = vector.shape_cast %57 : vector<128xf32> to vector<1x128xf32>
    %cst_34 = arith.constant 5.000000e-02 : f32
    %59 = vector.broadcast %cst_34 : f32 to vector<128x128xf32>
    %60 = arith.cmpf ogt, %54, %59 : vector<128x128xf32>
    %61 = vector.broadcast %56 : vector<128x1xf32> to vector<128x128xf32>
    %62 = arith.cmpf oeq, %54, %61 : vector<128x128xf32>
    %63 = arith.andi %60, %62 : vector<128x128xi1>
    %64 = vector.broadcast %58 : vector<1x128xf32> to vector<128x128xf32>
    %65 = arith.cmpf oeq, %54, %64 : vector<128x128xf32>
    %66 = arith.andi %63, %65 : vector<128x128xi1>
    %c0_35 = arith.constant 0 : index
    %c0_36 = arith.constant 0 : index
    %c0_37 = arith.constant 0 : index
    %67 = vector.load %arg6[%c0_35, %c0_36, %c0_37] : memref<1x128x128xf32, #tpu.memory_space<vmem>>, vector<1x128x128xf32>
    %68 = vector.shape_cast %67 : vector<1x128x128xf32> to vector<128x128xf32>
    %69 = vector.shape_cast %54 : vector<128x128xf32> to vector<1x128x128xf32>
    tpu.vector_store %arg6[%c0_35, %c0_36, %c0_37], %69 {strides = array<i32>} : memref<1x128x128xf32, #tpu.memory_space<vmem>>, vector<1x128x128xf32>,
    %70 = arith.extui %66 : vector<128x128xi1> to vector<128x128xi8>
    %c0_38 = arith.constant 0 : index
    %c0_39 = arith.constant 0 : index
    %c0_40 = arith.constant 0 : index
    %71 = vector.load %arg7[%c0_38, %c0_39, %c0_40] : memref<1x128x128xi8, #tpu.memory_space<vmem>>, vector<1x128x128xi8>
    %72 = vector.shape_cast %71 : vector<1x128x128xi8> to vector<128x128xi8>
    %73 = vector.shape_cast %70 : vector<128x128xi8> to vector<1x128x128xi8>
    tpu.vector_store %arg7[%c0_38, %c0_39, %c0_40], %73 {strides = array<i32>} : memref<1x128x128xi8, #tpu.memory_space<vmem>>, vector<1x128x128xi8>,
    return
  }
  func.func @transform_0(%arg0: i32) -> (i32, i32) {
    %c0_i32 = arith.constant 0 : i32
    %c0_i32_0 = arith.constant 0 : i32
    %c0_i32_1 = arith.constant 0 : i32
    return %c0_i32, %c0_i32_0 : i32, i32
  }
  func.func @transform_1(%arg0: i32) -> (i32, i32, i32) {
    %c0_i32 = arith.constant 0 : i32
    %c0_i32_0 = arith.constant 0 : i32
    %c0_i32_1 = arith.constant 0 : i32
    return %arg0, %c0_i32, %c0_i32_0 : i32, i32, i32
  }
  func.func @transform_2(%arg0: i32) -> (i32, i32, i32) {
    %c0_i32 = arith.constant 0 : i32
    %c0_i32_0 = arith.constant 0 : i32
    %c0_i32_1 = arith.constant 0 : i32
    return %arg0, %c0_i32, %c0_i32_0 : i32, i32, i32
  }
  func.func @transform_3(%arg0: i32) -> (i32, i32, i32) {
    %c0_i32 = arith.constant 0 : i32
    %c0_i32_0 = arith.constant 0 : i32
    %c0_i32_1 = arith.constant 0 : i32
    return %arg0, %c0_i32, %c0_i32_0 : i32, i32, i32
  }
  func.func @transform_4(%arg0: i32) -> (i32, i32, i32) {
    %c0_i32 = arith.constant 0 : i32
    %c0_i32_0 = arith.constant 0 : i32
    %c0_i32_1 = arith.constant 0 : i32
    return %arg0, %c0_i32, %c0_i32_0 : i32, i32, i32
  }
  func.func @transform_5(%arg0: i32) -> (i32, i32, i32) {
    %c0_i32 = arith.constant 0 : i32
    %c0_i32_0 = arith.constant 0 : i32
    %c0_i32_1 = arith.constant 0 : i32
    return %arg0, %c0_i32, %c0_i32_0 : i32, i32, i32
  }
  func.func @transform_6(%arg0: i32) -> (i32, i32, i32) {
    %c0_i32 = arith.constant 0 : i32
    %c0_i32_0 = arith.constant 0 : i32
    %c0_i32_1 = arith.constant 0 : i32
    return %arg0, %c0_i32, %c0_i32_0 : i32, i32, i32
  }
  func.func @transform_7(%arg0: i32) -> (i32, i32, i32) {
    %c0_i32 = arith.constant 0 : i32
    %c0_i32_0 = arith.constant 0 : i32
    %c0_i32_1 = arith.constant 0 : i32
    return %arg0, %c0_i32, %c0_i32_0 : i32, i32, i32
  }
  func.func @transform_8(%arg0: i32) -> (i32, i32, i32) {
    %c0_i32 = arith.constant 0 : i32
    %c0_i32_0 = arith.constant 0 : i32
    %c0_i32_1 = arith.constant 0 : i32
    return %arg0, %c0_i32, %c0_i32_0 : i32, i32, i32
  }
}

</mosaic_0001>

<bundles_post_ra>
// kernel: tpu_custom_call.1
= control target key start
LH: loop header
LB: loop body
LE: loop exit
PB: predicated region body
PF: predicated region fallthrough
CT: control target
= control target key end

     0   :  { %s3183_s0 = inlined_call_operand.hbm [shape: f32[128,128], index: 0, kind: input, shape index: {}]   ;;  %s3184_s1 = inlined_call_operand.vmem [shape: f32[2,128,128], index: 1, kind: input, shape index: {}]   ;;  %s3185_s2 = inlined_call_operand.hbm [shape: f32[2,128,128], index: 2, kind: input, shape index: {}]   ;;  %s3186_s3 = inlined_call_operand.vmem [shape: f32[2,128,1], index: 3, kind: input, shape index: {}]   ;;  %s3187_s4 = inlined_call_operand.vmem [shape: f32[2,1,128], index: 4, kind: input, shape index: {}]   ;;  %s3188_s5 = inlined_call_operand.hbm [shape: f32[2,128,128], index: 5, kind: output, shape index: {0}]   ;;  %s3189_s6 = inlined_call_operand.hbm [shape: s8[2,128,128], index: 6, kind: output, shape index: {1}]   ;;  %s3190_s7 = inlined_call_operand.hbm [shape: f32[2,128,128], index: 7, kind: output, shape index: {2}]   ;;  %s3191_s8 = inlined_call_operand.hbm [shape: f32[2,128,128], index: 8, kind: output, shape index: {3}]  }
   0x1   :  { %3195 = sst [smem:[#allocation19_spill]] %s3183_s0 }
   0x2   :  { %3196 = sst [smem:[#allocation20_spill]] %s3184_s1 }
   0x3   :  { %3197 = sst [smem:[#allocation21_spill]] %s3185_s2 }
   0x4   :  { %3198 = sst [smem:[#allocation22_spill]] %s3186_s3 }
   0x5   :  { %14 = vsyncpa [#allocation3], 0 }
   0x6   :  { %15 = vsyncpa [#allocation6], 0 }
   0x7   :  { %17 = vsyncpa [#allocation6 + $0x1], 0 }
   0x8   :  { %18 = vsyncpa [#allocation4], 0 }
   0x9   :  { %20 = vsyncpa [#allocation4 + $0x1], 0 }
   0xa   :  { %21 = vsyncpa [#allocation9], 0 }
   0xb   :  { %23 = vsyncpa [#allocation9 + $0x1], 0 }
   0xc   :  { %24 = vsyncpa [#allocation12], 0 }
   0xd   :  { %26 = vsyncpa [#allocation12 + $0x1], 0  ;;  %s2226_s27 = smov 0   ;;  %s2228_s28 = smov 0  }
   0xe   :  { %s2230_s29 = smov 0   ;;  %s2232_s30 = smov 0  }
   0xf LB: > { %s2247_s9 = sadd.s32 4294967295, %s2172_s30   ;;  %s3192_s10 = sadd.s32 4294967294, %s2172_s30   ;;  %s2172_s30 = sphi %s2232_s30, %s3237_s30   ;;  %s2168_s29 = sphi %s2230_s29, %s3236_s29   ;;  %s2164_s28 = sphi %s2228_s28, %s3235_s28   ;;  %s2160_s27 = sphi %s2226_s27, %s3234_s27  }
  0x10   : > { %p99_p0 = scmp.ne.s32.totalorder %s2164_s28, %s2160_s27  ;;  %p100_p1 = scmp.eq.s32.totalorder %s2247_s9, 0 }
  0x11   : > { %p175_p2 = scmp.eq.s32.totalorder %s2247_s9, 1  ;;  %p181_p3 = scmp.eq.s32.totalorder %s3192_s10, 1 }
  0x12   : > { %p2258_p4 = por %p100_p1, %p99_p0  ;;  %p1725_p5 = scmp.ge.s32.totalorder %s2172_s30, 1 }
  0x13   : > { %p2263_p6 = por %p181_p3, %p99_p0  ;;  %p266_p7 = scmp.lt.s32.totalorder %s2172_s30, 3 }
  0x14   : > { %s3201_s0 = sld [smem:[#allocation19_spill]]  ;;  %s2174_s17 = smov [#allocation2]  }
  0x15   : > { %p2271_p8 = pnand %p1725_p5, %p266_p7  ;;  %s279_s18 = sshll.u32 %s2174_s17, 4  ;;  %s280_s18 = int_to_ptr.vmem [resolvable:$true] %s279_s18 }
  0x16   : > { %s2281_s19 = sadd.s32 1, %s2172_s30   ;;  %s3193_s20 = smov 128  }
  0x17   : > { %p1785_p9 = pneg %p2271_p8  ;;  %s3194_s21 = smov 8  }
  0x18   : > { %s83_s22 = ssub.s32 %s2172_s30, %s2281_s19  ;;  %s86_s23 = sadd.s32 1, %s2168_s29 }
  0x19   : > { %p1786_p10 = pnand %p1785_p9, %p100_p1  ;;  %p84_p12 = scmp.eq.s32.totalorder %s83_s22, 0 }
  0x1a   : > { %s277_s15 = sshll.u32 %s3201_s0, 4  ;;  %p93_p13 = scmp.ne.s32.totalorder %s2168_s29, %s2164_s28  ;;  %s278_s15 = int_to_ptr.hbm [resolvable:$true] %s277_s15 }
  0x1b   : > { %1788 = dma.hbm_to_vmem [thread:$0]  (!%p1786_p10), %s278_s15, 2048, %s280_s18, [#allocation3], %s3193_s20, %s3193_s20, %s3194_s21  }
  0x1c   : > { %p94_p0 = scmp.eq.s32.totalorder %s2172_s30, 0  ;;  %p2297_p3 = por %p175_p2, %p93_p13 }
  0x1d   : > { %s2293_s24 = scalar_select %p84_p12, %s2168_s29, %s86_s23  }
  0x1e   : > { %p1807_p5 = scmp.lt.s32.totalorder %s2172_s30, 2  ;;  %s301_s26 = sand.u32 1, %s2168_s29  }
  0x1f   : > { %3203 = sst [smem:[#allocation18_spill]] %s2293_s24  ;;  %s1756_s13 = sshll.u32 %s2172_s30, 7 }
  0x20   : > { %p95_p7 = por %p94_p0, %p93_p13  ;;  %s1728_s14 = sshll.u32 %s301_s26, 7 }
  0x21   : > { %s3205_s2 = sld [smem:[#allocation21_spill]]  ;;  %s305_s22 = scalar_lea.vmem [#allocation5], %s1728_s14 }
  0x22   : > { %s313_s20 = sshll.u32 %s305_s22, 4  ;;  %p2307_p9 = pnand %p1807_p5, %p95_p7  ;;  %s314_s20 = int_to_ptr.vmem [resolvable:$true] %s313_s20 }
  0x23   : > { %s302_s21 = scalar_lea.sflag [#allocation6], %s301_s26 }
  0x24   : > { %p1984_p10 = pneg %p2307_p9 }
  0x27   : > { %s310_s15 = scalar_lea.hbm %s3205_s2, %s1756_s13  ;;  %s1987_s14 = scalar_lea.hbm %s3205_s2, 256 }
  0x28   : > { %s311_s18 = sshll.u32 %s310_s15, 4  ;;  %s312_s18 = int_to_ptr.hbm [resolvable:$true] %s311_s18 }
  0x29   : > { %s1980_s0 = sshra.s32 %s312_s18, 4  ;;  %s1981_s0 = int_to_ptr.hbm [resolvable:$true] %s1980_s0 }
  0x2a   : > { %s1982_s24 = scalar_lea.hbm %s1981_s0, 128  ;;  %p1988_p0 = scmp.lt.s32.totalorder %s1981_s0, %s3205_s2 }
  0x2b   : > { %p1983_p2 = scmp.ne.s32.totalorder %s1981_s0, %s1982_s24  ;;  %p1989_p5 = scmp.lt.s32.totalorder %s1987_s14, %s1982_s24 }
  0x2d   : > { %p1985_p12 = pnand %p1984_p10, %p1983_p2  ;;  %p1990_p7 = por %p1989_p5, %p1988_p0 }
  0x2f   : > { %p1986_p13 = pneg %p1985_p12 }
  0x31   : > { %p1991_p11 = pnand %p1990_p7, %p1986_p13 }
  0x33   : > { %1994 = shalt.err (!%p1991_p11)
}
  0x34   : > { %s3207_s26 = smov 8   ;;  %s3208_s22 = smov 128  }
  0x35   : > { %1792 = dma.hbm_to_vmem [thread:$0]  (!%p2307_p9), %s312_s18, 2048, %s314_s20, %s302_s21, %s3208_s22, %s3208_s22, %s3207_s26  }
  0x36   : > { %339 = sbr.rel (%p2271_p8) target bundleno = 1249 (0x4e1), region = 40 }
  0x3b   : > { %2139 = dma.done.wait (%p100_p1), [#allocation3], 2048  }
  0x3c   : > { %2141 = vsyncadd (%p100_p1), [#allocation3], 4294965248  ;;  %s2331_s0 = sand.u32 1, %s2164_s28  }
  0x3d   : > { %s2334_s24 = sshll.u32 %s2331_s0, 7  ;;  %s347_s23 = scalar_lea.sflag [#allocation6], %s2331_s0 }
  0x3e   : > { %s2338_s20 = scalar_lea.vmem [#allocation5], %s2334_s24 }
  0x3f   : > { %2143 = dma.done.wait (%p2258_p4), %s347_s23, 2048  }
  0x40   : > { %2145 = vsyncadd (%p2258_p4), %s347_s23, 4294965248  ;;  %v442_v0 = vld [vmem:[#allocation2 + $0x78] sm:$0xff]  ;;  %v441_v1 = vld [vmem:[#allocation2 + $0x70] sm:$0xff]  ;;  %p412_p1 = scmp.lt.s32.totalorder %s2247_s9, 1  ;;  %s3209_s1 = sld [smem:[#allocation20_spill]] }
  0x41   : > { %540 = vmatpush.msra.mxu1 %v442_v0  ;;  %459 = vmatpush.msra.mxu0 %v442_v0  ;;  %v440_v2 = vld [vmem:[#allocation2 + $0x68] sm:$0xff]  ;;  %v439_v3 = vld [vmem:[#allocation2 + $0x60] sm:$0xff]  ;;  %v438_v4 = vld [vmem:[#allocation2 + $0x58] sm:$0xff]  ;;  %s2374_s13 = scalar_lea.vmem [#allocation11], %s2334_s24  ;;  %s2411_s14 = scalar_lea.vmem [#allocation10], %s2334_s24 }
  0x42   : > { %v437_v5 = vld [vmem:[#allocation2 + $0x50] sm:$0xff]  ;;  %v436_v6 = vld [vmem:[#allocation2 + $0x48] sm:$0xff]  ;;  %v435_v7 = vld [vmem:[#allocation2 + $0x40] sm:$0xff]  ;;  %s2360_s11 = scalar_select %p412_p1, %s2247_s9, 1 }
  0x43   : > { %541 = vmatpush.msra.mxu1 %v441_v1  ;;  %460 = vmatpush.msra.mxu0 %v441_v1  ;;  %v434_v8 = vld [vmem:[#allocation2 + $0x38] sm:$0xff]  ;;  %v433_v9 = vld [vmem:[#allocation2 + $0x30] sm:$0xff]  ;;  %v432_v10 = vld [vmem:[#allocation2 + $0x28] sm:$0xff]  ;;  %s3210_s3 = sld [smem:[#allocation22_spill]]  ;;  %s1429_s15 = scalar_lea.sflag [#allocation4], %s2331_s0 }
  0x44   : > { %v431_v11 = vld [vmem:[#allocation2 + $0x20] sm:$0xff]  ;;  %v430_v12 = vld [vmem:[#allocation2 + $0x18] sm:$0xff]  ;;  %v429_v13 = vld [vmem:[#allocation2 + $0x10] sm:$0xff]  ;;  %s1757_s16 = sshll.u32 %s2360_s11, 7 }
  0x45   : > { %542 = vmatpush.msra.mxu1 %v440_v2  ;;  %461 = vmatpush.msra.mxu0 %v440_v2  ;;  %v428_v14 = vld [vmem:[#allocation2 + $0x8] sm:$0xff]  ;;  %v427_v15 = vld [vmem:[#allocation2] sm:$0xff]  ;;  %v526_v18 = vld [vmem:[%s2338_s20 + $0x10] sm:$0xff] }
  0x46   : > { %v524_v16 = vld [vmem:[%s2338_s20] sm:$0xff]  ;;  %v525_v17 = vld [vmem:[%s2338_s20 + $0x8] sm:$0xff]  ;;  %v527_v19 = vld [vmem:[%s2338_s20 + $0x18] sm:$0xff]  ;;  %s2369_s10 = scalar_lea.vmem %s3209_s1, %s1757_s16  ;;  %s2030_s1 = scalar_lea.hbm %s3188_s5, 256 }
  0x47   : > { %543 = vmatpush.msra.mxu1 %v439_v3  ;;  %462 = vmatpush.msra.mxu0 %v439_v3  ;;  %v528_v20 = vld [vmem:[%s2338_s20 + $0x20] sm:$0xff]  ;;  %v529_v21 = vld [vmem:[%s2338_s20 + $0x28] sm:$0xff]  ;;  %v530_v22 = vld [vmem:[%s2338_s20 + $0x30] sm:$0xff] }
  0x48   : > { %v531_v23 = vld [vmem:[%s2338_s20 + $0x38] sm:$0xff]  ;;  %v532_v24 = vld [vmem:[%s2338_s20 + $0x40] sm:$0xff]  ;;  %v533_v25 = vld [vmem:[%s2338_s20 + $0x48] sm:$0xff] }
  0x49   : > { %544 = vmatpush.msra.mxu1 %v438_v4  ;;  %463 = vmatpush.msra.mxu0 %v438_v4  ;;  %v534_v26 = vld [vmem:[%s2338_s20 + $0x50] sm:$0xff]  ;;  %v535_v27 = vld [vmem:[%s2338_s20 + $0x58] sm:$0xff]  ;;  %v536_v28 = vld [vmem:[%s2338_s20 + $0x60] sm:$0xff]  ;;  %s2432_s26 = scalar_lea.vmem %s3210_s3, %s1757_s16 }
  0x4a   : > { %v537_v29 = vld [vmem:[%s2338_s20 + $0x68] sm:$0xff]  ;;  %v538_v30 = vld [vmem:[%s2338_s20 + $0x70] sm:$0xff]  ;;  %v539_v31 = vld [vmem:[%s2338_s20 + $0x78] sm:$0xff]  ;;  %s424_s20 = scalar_lea.vmem %s3187_s4, %s2360_s11  ;;  %s2818_s11 = scalar_lea.vmem [#allocation7], %s2334_s24 }
  0x4b   : > { %545 = vmatpush.msra.mxu1 %v437_v5  ;;  %464 = vmatpush.msra.mxu0 %v437_v5  ;;  %v443_v32 = vld [vmem:[%s2369_s10] sm:$0xff]  ;;  %v444_v34 = vld [vmem:[%s2369_s10 + $0x8] sm:$0xff]  ;;  %v445_v36 = vld [vmem:[%s2369_s10 + $0x10] sm:$0xff]  ;;  %s2918_s24 = sshll.u32 %s2247_s9, 7 }
  0x4c   : > { %v446_v39 = vld [vmem:[%s2369_s10 + $0x18] sm:$0xff]  ;;  %v447_v41 = vld [vmem:[%s2369_s10 + $0x20] sm:$0xff]  ;;  %v448_v44 = vld [vmem:[%s2369_s10 + $0x28] sm:$0xff]  ;;  %s1455_s18 = scalar_lea.hbm %s3188_s5, %s2918_s24 }
  0x4d   : > { %546 = vmatpush.msra.mxu1 %v436_v6  ;;  %465 = vmatpush.msra.mxu0 %v436_v6  ;;  %v449_v46 = vld [vmem:[%s2369_s10 + $0x30] sm:$0xff]  ;;  %v450_v49 = vld [vmem:[%s2369_s10 + $0x38] sm:$0xff]  ;;  %v451_v51 = vld [vmem:[%s2369_s10 + $0x40] sm:$0xff]  ;;  %s1458_s17 = sshll.u32 %s1455_s18, 4  ;;  %s1459_s17 = int_to_ptr.hbm [resolvable:$true] %s1458_s17 }
  0x4e   : > { %v452_v54 = vld [vmem:[%s2369_s10 + $0x48] sm:$0xff]  ;;  %v453_v56 = vld [vmem:[%s2369_s10 + $0x50] sm:$0xff]  ;;  %v454_v59 = vld [vmem:[%s2369_s10 + $0x58] sm:$0xff] }
  0x4f   : > { %547 = vmatpush.msra.mxu1 %v435_v7  ;;  %466 = vmatpush.msra.mxu0 %v435_v7  ;;  %v455_v3 = vld [vmem:[%s2369_s10 + $0x60] sm:$0xff]  ;;  %v456_v6 = vld [vmem:[%s2369_s10 + $0x68] sm:$0xff] }
  0x51   : > { %548 = vmatpush.msra.mxu1 %v434_v8  ;;  %467 = vmatpush.msra.mxu0 %v434_v8 }
  0x53   : > { %549 = vmatpush.msra.mxu1 %v433_v9  ;;  %468 = vmatpush.msra.mxu0 %v433_v9 }
  0x55   : > { %550 = vmatpush.msra.mxu1 %v432_v10  ;;  %469 = vmatpush.msra.mxu0 %v432_v10 }
  0x57   : > { %551 = vmatpush.msra.mxu1 %v431_v11  ;;  %470 = vmatpush.msra.mxu0 %v431_v11  ;;  %v457_v11 = vld [vmem:[%s2369_s10 + $0x70] sm:$0xff] }
  0x59   : > { %552 = vmatpush.msra.mxu1 %v430_v12  ;;  %471 = vmatpush.msra.mxu0 %v430_v12 }
  0x5b   : > { %553 = vmatpush.msra.mxu1 %v429_v13  ;;  %472 = vmatpush.msra.mxu0 %v429_v13  ;;  %v458_v13 = vld [vmem:[%s2369_s10 + $0x78] sm:$0xff]  ;;  %s1456_s10 = sshll.u32 %s2818_s11, 4  ;;  %s1457_s10 = int_to_ptr.vmem [resolvable:$true] %s1456_s10 }
  0x5d   : > { %554 = vmatpush.msra.mxu1 %v428_v14  ;;  %473 = vmatpush.msra.mxu0 %v428_v14 }
  0x5f   : > { %555 = vmatpush.msra.mxu1 %v427_v15  ;;  %474 = vmatpush.msra.mxu0 %v427_v15  ;;  %v720_v15 = vld [vmem:[%s2432_s26 + $0x10] sm:$0xff] }
  0x60   : > { %556 = vmatmul.f32.vlgmr.msra.gmra.mxu1 %v524_v16  ;;  %475 = vmatmul.f32.vlgmr.msra.gmra.mxu0 %v443_v32  ;;  %vm736_vm0 = vcmp.gt.f32.partialorder %v720_v15, 0.5  ;;  %v719_v16 = vld [vmem:[%s2432_s26 + $0x8] sm:$0xff]  ;;  %v725_v32 = vld [vmem:[%s2432_s26 + $0x38] sm:$0xff] }
  0x61   : > { %vm735_vm1 = vcmp.gt.f32.partialorder %v719_v16, 0.5  ;;  %vm741_vm5 = vcmp.gt.f32.partialorder %v725_v32, 0.5 }
  0x68   : > { %559 = vmatmul.f32.gmra.mxu1 %v525_v17  ;;  %478 = vmatmul.f32.gmra.mxu0 %v444_v34  ;;  %v2177_v17 = vmov 0   ;;  %v722_v34 = vld [vmem:[%s2432_s26 + $0x20] sm:$0xff] }
  0x69   : > { %1851 = vset.pattern.permute.xlu1 %v2177_v17  ;;  %1850 = vset.pattern.permute.xlu0 %v2177_v17  ;;  %vm738_vm6 = vcmp.gt.f32.partialorder %v722_v34, 0.5 }
  0x6a   : > { %1849 = vset.pattern.permute.xlu2 %v2177_v17 }
  0x70   : > { %562 = vmatmul.f32.gmra.mxu1 %v526_v18  ;;  %481 = vmatmul.f32.gmra.mxu0 %v445_v36  ;;  %v1030_v18 = vsel %vm736_vm0, 1, %v2177_v17 }
  0x71   : > { %1051 = vperm.xlu1 %1851, %v1030_v18  }
  0x78   : > { %565 = vmatmul.f32.gmra.mxu1 %v527_v19  ;;  %484 = vmatmul.f32.gmra.mxu0 %v446_v39  ;;  %v1029_v19 = vsel %vm735_vm1, 1, %v2177_v17  ;;  %v726_v39 = vld [vmem:[%s2432_s26 + $0x40] sm:$0xff] }
  0x79   : > { %1048 = vperm.xlu0 %1850, %v1029_v19   ;;  %vm742_vm7 = vcmp.gt.f32.partialorder %v726_v39, 0.5 }
  0x80   : > { %568 = vmatmul.f32.gmra.mxu1 %v528_v20  ;;  %487 = vmatmul.f32.gmra.mxu0 %v447_v41  ;;  %v1036_v41 = vsel %vm742_vm7, 1, %v2177_v17 }
  0x81   : > { %1069 = vperm.xlu0 %1850, %v1036_v41  }
  0x88   : > { %571 = vmatmul.f32.gmra.mxu1 %v529_v21  ;;  %490 = vmatmul.f32.gmra.mxu0 %v448_v44 }
  0x90   : > { %574 = vmatmul.f32.gmra.mxu1 %v530_v22  ;;  %493 = vmatmul.f32.gmra.mxu0 %v449_v46 }
  0x98   : > { %577 = vmatmul.f32.gmra.mxu1 %v531_v23  ;;  %496 = vmatmul.f32.gmra.mxu0 %v450_v49 }
  0xa0   : > { %580 = vmatmul.f32.gmra.mxu1 %v532_v24  ;;  %499 = vmatmul.f32.gmra.mxu0 %v451_v51  ;;  %v718_v24 = vld [vmem:[%s2432_s26] sm:$0xff] }
  0xa1   : > { %vm734_vm2 = vcmp.gt.f32.partialorder %v718_v24, 0.5  ;;  %v750_v51 = vld [vmem:[%s424_s20] sm:$0x1] }
  0xa2   : > { %vm751_vm9 = vcmp.gt.f32.partialorder %v750_v51, 0.5 }
  0xa8   : > { %583 = vmatmul.f32.gmra.mxu1 %v533_v25  ;;  %502 = vmatmul.f32.gmra.mxu0 %v452_v54  ;;  %v723_v25 = vld [vmem:[%s2432_s26 + $0x28] sm:$0xff] }
  0xa9   : > { %vm739_vm3 = vcmp.gt.f32.partialorder %v723_v25, 0.5 }
  0xb0   : > { %586 = vmatmul.f32.gmra.mxu1 %v534_v26  ;;  %505 = vmatmul.f32.gmra.mxu0 %v453_v56  ;;  %v1028_v26 = vsel %vm734_vm2, 1, %v2177_v17 }
  0xb1   : > { %1045 = vperm.xlu2 %1849, %v1028_v26  }
  0xb8   : > { %589 = vmatmul.f32.gmra.mxu1 %v535_v27  ;;  %508 = vmatmul.f32.gmra.mxu0 %v454_v59  ;;  %v1033_v27 = vsel %vm739_vm3, 1, %v2177_v17 }
  0xb9   : > { %1060 = vperm.xlu1 %1851, %v1033_v27  }
  0xc0   : > { %592 = vmatmul.f32.gmra.mxu1 %v536_v28  ;;  %511 = vmatmul.f32.gmra.mxu0 %v455_v3 }
  0xc8   : > { %595 = vmatmul.f32.gmra.mxu1 %v537_v29  ;;  %514 = vmatmul.f32.gmra.mxu0 %v456_v6 }
  0xd0   : > { %598 = vmatmul.f32.gmra.mxu1 %v538_v30  ;;  %517 = vmatmul.f32.gmra.mxu0 %v457_v11 }
  0xd8   : > { %601 = vmatmul.f32.gmra.mxu1 %v539_v31  ;;  %520 = vmatmul.f32.gmra.mxu0 %v458_v13  ;;  %v721_v31 = vld [vmem:[%s2432_s26 + $0x18] sm:$0xff] }
  0xd9   : > { %vm737_vm4 = vcmp.gt.f32.partialorder %v721_v31, 0.5 }
  0xdd   : > { %v557_v33 = vpop.f32.mrf.mxu1  ;;  %v2408_v0 = vpop.f32.mrf.mxu0 }
  0xde   : > { %621 = vst [vmem:[%s2374_s13] sm:$0xff] %v557_v33 }
  0xdf   : > { %605 = vst [vmem:[%s2411_s14] sm:$0xff] %v2408_v0 }
  0xe5   : > { %v560_v35 = vpop.f32.mrf.mxu1  ;;  %v479_v4 = vpop.f32.mrf.mxu0 }
  0xe6   : > { %622 = vst [vmem:[%s2374_s13 + $0x8] sm:$0xff] %v560_v35  ;;  %v2380_v37 = vpack.c.bf16 %v560_v35, %v557_v33  ;;  %v637_v22 = vpack.c.bf16 %v479_v4, %v2408_v0  ;;  %v1031_v33 = vsel %vm737_vm4, 1, %v2177_v17  ;;  %v1035_v35 = vsel %vm741_vm5, 1, %v2177_v17 }
  0xe7   : > { %606 = vst [vmem:[%s2411_s14 + $0x8] sm:$0xff] %v479_v4  ;;  %1054 = vperm.xlu2 %1849, %v1031_v33   ;;  %1066 = vperm.xlu1 %1851, %v1035_v35  }
  0xed   : > { %v563_v38 = vpop.f32.mrf.mxu1  ;;  %v482_v7 = vpop.f32.mrf.mxu0 }
  0xee   : > { %623 = vst [vmem:[%s2374_s13 + $0x10] sm:$0xff] %v563_v38 }
  0xef   : > { %607 = vst [vmem:[%s2411_s14 + $0x10] sm:$0xff] %v482_v7 }
  0xf5   : > { %v566_v40 = vpop.f32.mrf.mxu1  ;;  %v485_v9 = vpop.f32.mrf.mxu0 }
  0xf6   : > { %624 = vst [vmem:[%s2374_s13 + $0x18] sm:$0xff] %v566_v40  ;;  %v2386_v42 = vpack.c.bf16 %v566_v40, %v563_v38  ;;  %v638_v23 = vpack.c.bf16 %v485_v9, %v482_v7  ;;  %v724_v40 = vld [vmem:[%s2432_s26 + $0x30] sm:$0xff] }
  0xf7   : > { %608 = vst [vmem:[%s2411_s14 + $0x18] sm:$0xff] %v485_v9  ;;  %vm740_vm8 = vcmp.gt.f32.partialorder %v724_v40, 0.5 }
  0xfd   : > { %v569_v43 = vpop.f32.mrf.mxu1  ;;  %v488_v10 = vpop.f32.mrf.mxu0 }
  0xfe   : > { %625 = vst [vmem:[%s2374_s13 + $0x20] sm:$0xff] %v569_v43 }
  0xff   : > { %609 = vst [vmem:[%s2411_s14 + $0x20] sm:$0xff] %v488_v10 }
 0x105   : > { %v572_v45 = vpop.f32.mrf.mxu1  ;;  %v491_v12 = vpop.f32.mrf.mxu0 }
 0x106   : > { %626 = vst [vmem:[%s2374_s13 + $0x28] sm:$0xff] %v572_v45  ;;  %v2392_v47 = vpack.c.bf16 %v572_v45, %v569_v43  ;;  %v639_v30 = vpack.c.bf16 %v491_v12, %v488_v10 }
 0x107   : > { %610 = vst [vmem:[%s2411_s14 + $0x28] sm:$0xff] %v491_v12 }
 0x10b   : > { %v1046_v54 = vpop.permute.xlu2 %1045 }
 0x10c   : > { %vm1092_vm10 = vcmp.eq.s32.totalorder %v1046_v54, 1  ;;  %v728_v54 = vld [vmem:[%s2432_s26 + $0x50] sm:$0xff] }
 0x10d   : > { %v575_v48 = vpop.f32.mrf.mxu1  ;;  %v494_v14 = vpop.f32.mrf.mxu0  ;;  %vm744_vm5 = vcmp.gt.f32.partialorder %v728_v54, 0.5 }
 0x10e   : > { %627 = vst [vmem:[%s2374_s13 + $0x30] sm:$0xff] %v575_v48 }
 0x10f   : > { %611 = vst [vmem:[%s2411_s14 + $0x30] sm:$0xff] %v494_v14 }
 0x115   : > { %v578_v50 = vpop.f32.mrf.mxu1  ;;  %v497_v20 = vpop.f32.mrf.mxu0 }
 0x116   : > { %628 = vst [vmem:[%s2374_s13 + $0x38] sm:$0xff] %v578_v50  ;;  %v648_v52 = vpack.c.bf16 %v578_v50, %v575_v48  ;;  %v640_v38 = vpack.c.bf16 %v497_v20, %v494_v14 }
 0x117   : > { %612 = vst [vmem:[%s2411_s14 + $0x38] sm:$0xff] %v497_v20 }
 0x11d   : > { %v581_v53 = vpop.f32.mrf.mxu1  ;;  %v500_v21 = vpop.f32.mrf.mxu0 }
 0x11e   : > { %629 = vst [vmem:[%s2374_s13 + $0x40] sm:$0xff] %v581_v53 }
 0x11f   : > { %613 = vst [vmem:[%s2411_s14 + $0x40] sm:$0xff] %v500_v21 }
 0x125   : > { %v584_v55 = vpop.f32.mrf.mxu1  ;;  %v503_v28 = vpop.f32.mrf.mxu0 }
 0x126   : > { %630 = vst [vmem:[%s2374_s13 + $0x48] sm:$0xff] %v584_v55  ;;  %v649_v57 = vpack.c.bf16 %v584_v55, %v581_v53  ;;  %v641_v43 = vpack.c.bf16 %v503_v28, %v500_v21 }
 0x127   : > { %614 = vst [vmem:[%s2411_s14 + $0x48] sm:$0xff] %v503_v28 }
 0x12d   : > { %v587_v58 = vpop.f32.mrf.mxu1  ;;  %v506_v29 = vpop.f32.mrf.mxu0 }
 0x12e   : > { %631 = vst [vmem:[%s2374_s13 + $0x50] sm:$0xff] %v587_v58 }
 0x12f   : > { %615 = vst [vmem:[%s2411_s14 + $0x50] sm:$0xff] %v506_v29 }
 0x135   : > { %v590_v60 = vpop.f32.mrf.mxu1  ;;  %v509_v36 = vpop.f32.mrf.mxu0 }
 0x136   : > { %632 = vst [vmem:[%s2374_s13 + $0x58] sm:$0xff] %v590_v60  ;;  %v650_v8 = vpack.c.bf16 %v590_v60, %v587_v58  ;;  %v642_v44 = vpack.c.bf16 %v509_v36, %v506_v29  ;;  %v1052_v60 = vpop.permute.xlu1 %1051 }
 0x137   : > { %616 = vst [vmem:[%s2411_s14 + $0x58] sm:$0xff] %v509_v36  ;;  %vm1094_vm12 = vcmp.eq.s32.totalorder %v1052_v60, 1 }
 0x13d   : > { %v593_v61 = vpop.f32.mrf.mxu1  ;;  %v512_v45 = vpop.f32.mrf.mxu0 }
 0x13e   : > { %633 = vst [vmem:[%s2374_s13 + $0x60] sm:$0xff] %v593_v61  ;;  %v1061_v18 = vpop.permute.xlu1 %1060 }
 0x13f   : > { %617 = vst [vmem:[%s2411_s14 + $0x60] sm:$0xff] %v512_v45  ;;  %vm1097_vm0 = vcmp.eq.s32.totalorder %v1061_v18, 1 }
 0x141   : > { %v1055_v4 = vpop.permute.xlu2 %1054 }
 0x142   : > { %vm1095_vm14 = vcmp.eq.s32.totalorder %v1055_v4, 1 }
 0x145   : > { %v596_v62 = vpop.f32.mrf.mxu1  ;;  %v515_v46 = vpop.f32.mrf.mxu0 }
 0x146   : > { %634 = vst [vmem:[%s2374_s13 + $0x68] sm:$0xff] %v596_v62  ;;  %v651_v5 = vpack.c.bf16 %v596_v62, %v593_v61  ;;  %v1049_v61 = vpop.permute.xlu0 %1048 }
 0x147   : > { %618 = vst [vmem:[%s2411_s14 + $0x68] sm:$0xff] %v515_v46  ;;  %vm1093_vm13 = vcmp.eq.s32.totalorder %v1049_v61, 1 }
 0x14d   : > { %v599_v63 = vpop.f32.mrf.mxu1  ;;  %v518_v48 = vpop.f32.mrf.mxu0 }
 0x14e   : > { %635 = vst [vmem:[%s2374_s13 + $0x70] sm:$0xff] %v599_v63  ;;  %v1070_v36 = vpop.permute.xlu0 %1069 }
 0x14f   : > { %619 = vst [vmem:[%s2411_s14 + $0x70] sm:$0xff] %v518_v48  ;;  %vm1100_vm3 = vcmp.eq.s32.totalorder %v1070_v36, 1 }
 0x155   : > { %v602_v1 = vpop.f32.mrf.mxu1  ;;  %v521_v49 = vpop.f32.mrf.mxu0 }
 0x156   : > { %636 = vst [vmem:[%s2374_s13 + $0x78] sm:$0xff] %v602_v1  ;;  %v652_v2 = vpack.c.bf16 %v602_v1, %v599_v63  ;;  %v644_v50 = vpack.c.bf16 %v521_v49, %v518_v48 }
 0x157   : > { %620 = vst [vmem:[%s2411_s14 + $0x78] sm:$0xff] %v521_v49  ;;  %v729_v49 = vld [vmem:[%s2432_s26 + $0x58] sm:$0xff] }
 0x158   : > { %653 = vmatpush.bf16.xpose.msrb.mxu1 %v652_v2  ;;  %1763 = vmatpush.bf16.xpose.msra.mxu2 %v652_v2  ;;  %vm745_vm4 = vcmp.gt.f32.partialorder %v729_v49, 0.5 }
 0x160   : > { %654 = vmatpush.bf16.xpose.msrb.mxu1 %v651_v5  ;;  %1764 = vmatpush.bf16.xpose.msra.mxu2 %v651_v5 }
 0x168   : > { %655 = vmatpush.bf16.xpose.msrb.mxu1 %v650_v8  ;;  %1765 = vmatpush.bf16.xpose.msra.mxu2 %v650_v8 }
 0x170   : > { %656 = vmatpush.bf16.xpose.msrb.mxu1 %v649_v57  ;;  %1766 = vmatpush.bf16.xpose.msra.mxu2 %v649_v57 }
 0x178   : > { %657 = vmatpush.bf16.xpose.msrb.mxu1 %v648_v52  ;;  %1767 = vmatpush.bf16.xpose.msra.mxu2 %v648_v52  ;;  %v752_v52 = vsel %vm751_vm9, 1, %v2177_v17 }
 0x179   : > { %v753_v53 = vperm.slane %v752_v52, 0 }
 0x17b   : > { %vm2475_vm11 = vcmp.eq.s32.totalorder %v753_v53, 1  ;;  %v1039_v53 = vsel %vm745_vm4, 1, %v2177_v17 }
 0x180   : > { %658 = vmatpush.bf16.xpose.msrb.mxu1 %v2392_v47  ;;  %1768 = vmatpush.bf16.xpose.msra.mxu2 %v2392_v47  ;;  %v643_v47 = vpack.c.bf16 %v515_v46, %v512_v45  ;;  %v2178_v45 = vmov 1.0  }
 0x181   : > { %851 = vmatpush.msra.mxu3 %v2178_v45 }
 0x183   : > { %852 = vmatpush.msra.mxu3 %v2178_v45 }
 0x185   : > { %853 = vmatpush.msra.mxu3 %v2178_v45 }
 0x187   : > { %854 = vmatpush.msra.mxu3 %v2178_v45 }
 0x188   : > { %659 = vmatpush.bf16.xpose.msrb.mxu1 %v2386_v42  ;;  %1769 = vmatpush.bf16.xpose.msra.mxu2 %v2386_v42  ;;  %v1034_v42 = vsel %vm740_vm8, 1, %v2177_v17 }
 0x189   : > { %855 = vmatpush.msra.mxu3 %v2178_v45 }
 0x18b   : > { %856 = vmatpush.msra.mxu3 %v2178_v45 }
 0x18d   : > { %857 = vmatpush.msra.mxu3 %v2178_v45 }
 0x18f   : > { %858 = vmatpush.msra.mxu3 %v2178_v45 }
 0x190   : > { %660 = vmatpush.bf16.xpose.msrb.mxu1 %v2380_v37  ;;  %1770 = vmatpush.bf16.xpose.msra.mxu2 %v2380_v37  ;;  %v1032_v37 = vsel %vm738_vm6, 1, %v2177_v17 }
 0x191   : > { %1057 = vperm.xlu2 %1849, %v1032_v37   ;;  %859 = vmatpush.msra.mxu3 %v2178_v45 }
 0x193   : > { %860 = vmatpush.msra.mxu3 %v2178_v45 }
 0x195   : > { %861 = vmatpush.msra.mxu3 %v2178_v45 }
 0x197   : > { %661 = vmatmul.bf16.vlgmr.msrb.gmra.mxu1 %v637_v22  ;;  %666 = vmatmul.bf16.vlgmr.msra.gmra.mxu2 %v638_v23 }
 0x198   : > { %862 = vmatpush.msra.mxu3 %v2178_v45 }
 0x199   : > { %1063 = vperm.xlu2 %1849, %v1034_v42  }
 0x19a   : > { %863 = vmatpush.msra.mxu3 %v2178_v45 }
 0x19c   : > { %864 = vmatpush.msra.mxu3 %v2178_v45 }
 0x19e   : > { %865 = vmatpush.msra.mxu3 %v2178_v45 }
 0x1a0   : > { %866 = vmatpush.msra.mxu3 %v2178_v45 }
 0x1a7   : > { %671 = vmatmul.bf16.gmra.mxu2 %v639_v30  ;;  %v1067_v30 = vpop.permute.xlu1 %1066 }
 0x1a8   : > { %vm1099_vm2 = vcmp.eq.s32.totalorder %v1067_v30, 1 }
 0x1b7   : > { %676 = vmatmul.bf16.gmra.mxu2 %v640_v38 }
 0x1c7   : > { %681 = vmatmul.bf16.gmra.mxu2 %v641_v43 }
 0x1d7   : > { %686 = vmatmul.bf16.gmra.mxu2 %v642_v44 }
 0x1e7   : > { %691 = vmatmul.bf16.gmra.mxu2 %v643_v47 }
 0x1eb   : > { %v1058_v11 = vpop.permute.xlu2 %1057 }
 0x1ec   : > { %vm1096_vm15 = vcmp.eq.s32.totalorder %v1058_v11, 1 }
 0x1f3   : > { %v1064_v24 = vpop.permute.xlu2 %1063 }
 0x1f4   : > { %vm1098_vm1 = vcmp.eq.s32.totalorder %v1064_v24, 1 }
 0x1f7   : > { %696 = vmatmul.bf16.gmra.mxu2 %v644_v50 }
 0x214   : > { %v662_v55 = vpop.f32.mrf.mxu1 }
 0x215   : > { %v702_v57 = vmul.f32 0.078125, %v662_v55  ;;  %v1038_v55 = vsel %vm744_vm5, 1, %v2177_v17 }
 0x217   : > { %v2479_v58 = vsel %vm1092_vm10, %v702_v57, -inf  ;;  %v2483_v59 = vsel %vm2475_vm11, %v702_v57, -inf  ;;  %v727_v57 = vld [vmem:[%s2432_s26 + $0x48] sm:$0xff] }
 0x218   : > { %771 = vmax.xlane.f32.xlu0 %v2483_v59  ;;  %vm743_vm6 = vcmp.gt.f32.partialorder %v727_v57, 0.5 }
 0x219   : > { %v1037_v60 = vsel %vm743_vm6, 1, %v2177_v17 }
 0x21a   : > { %v667_v62 = vpop.f32.mrf.mxu2 }
 0x21b   : > { %v704_v63 = vmul.f32 0.078125, %v667_v62 }
 0x21c   : > { %v664_v0 = vpop.f32.mrf.mxu1 }
 0x21d   : > { %v2486_v1 = vsel %vm1094_vm12, %v704_v63, -inf  ;;  %v703_v2 = vmul.f32 0.078125, %v664_v0  ;;  %v2490_v3 = vsel %vm2475_vm11, %v704_v63, -inf }
 0x21e   : > { %775 = vmax.xlane.f32.xlu1 %v2490_v3 }
 0x21f   : > { %v2493_v5 = vsel %vm1093_vm13, %v703_v2, -inf  ;;  %v2497_v6 = vsel %vm2475_vm11, %v703_v2, -inf }
 0x220   : > { %773 = vmax.xlane.f32.xlu0 %v2497_v6 }
 0x222   : > { %v669_v7 = vpop.f32.mrf.mxu2 }
 0x223   : > { %v705_v8 = vmul.f32 0.078125, %v669_v7 }
 0x225   : > { %v2500_v9 = vsel %vm1095_vm14, %v705_v8, -inf  ;;  %v2504_v10 = vsel %vm2475_vm11, %v705_v8, -inf }
 0x226   : > { %777 = vmax.xlane.f32.xlu1 %v2504_v10 }
 0x22a   : > { %v672_v12 = vpop.f32.mrf.mxu2 }
 0x22b   : > { %v706_v13 = vmul.f32 0.078125, %v672_v12 }
 0x22d   : > { %v2507_v14 = vsel %vm1096_vm15, %v706_v13, -inf  ;;  %v2511_v15 = vsel %vm2475_vm11, %v706_v13, -inf }
 0x22e   : > { %v1124_v16 = vmax.f32 %v2479_v58, %v2507_v14  ;;  %779 = vmax.xlane.f32.xlu2 %v2511_v15 }
 0x232   : > { %v674_v19 = vpop.f32.mrf.mxu2 }
 0x233   : > { %v707_v20 = vmul.f32 0.078125, %v674_v19 }
 0x235   : > { %v2516_v21 = vsel %vm1097_vm0, %v707_v20, -inf  ;;  %v2520_v22 = vsel %vm2475_vm11, %v707_v20, -inf }
 0x236   : > { %v1125_v23 = vmax.f32 %v2493_v5, %v2516_v21  ;;  %781 = vmax.xlane.f32.xlu2 %v2520_v22 }
 0x23a   : > { %v677_v25 = vpop.f32.mrf.mxu2 }
 0x23b   : > { %v708_v26 = vmul.f32 0.078125, %v677_v25 }
 0x23d   : > { %v2525_v27 = vsel %vm1098_vm1, %v708_v26, -inf  ;;  %v2529_v28 = vsel %vm2475_vm11, %v708_v26, -inf }
 0x23e   : > { %v1126_v29 = vmax.f32 %v2486_v1, %v2525_v27  ;;  %783 = vmax.xlane.f32.xlu0 %v2529_v28 }
 0x242   : > { %v679_v31 = vpop.f32.mrf.mxu2 }
 0x243   : > { %v709_v32 = vmul.f32 0.078125, %v679_v31 }
 0x245   : > { %v2534_v33 = vsel %vm1099_vm2, %v709_v32, -inf  ;;  %v2538_v34 = vsel %vm2475_vm11, %v709_v32, -inf }
 0x246   : > { %v1127_v35 = vmax.f32 %v2500_v9, %v2534_v33  ;;  %785 = vmax.xlane.f32.xlu1 %v2538_v34 }
 0x24a   : > { %v682_v37 = vpop.f32.mrf.mxu2 }
 0x24b   : > { %v710_v38 = vmul.f32 0.078125, %v682_v37 }
 0x24d   : > { %v2543_v39 = vsel %vm1100_vm3, %v710_v38, -inf  ;;  %v2547_v40 = vsel %vm2475_vm11, %v710_v38, -inf  ;;  %v733_v38 = vld [vmem:[%s2432_s26 + $0x78] sm:$0xff] }
 0x24e   : > { %v2550_v41 = vmax.f32 %v1124_v16, %v2543_v39  ;;  %787 = vmax.xlane.f32.xlu2 %v2547_v40  ;;  %vm749_vm8 = vcmp.gt.f32.partialorder %v733_v38, 0.5 }
 0x252   : > { %v684_v42 = vpop.f32.mrf.mxu2 }
 0x253   : > { %v2553_v43 = vmul.f32 0.078125, %v684_v42 }
 0x255   : > { %v2558_v44 = vsel %vm2475_vm11, %v2553_v43, -inf }
 0x256   : > { %789 = vmax.xlane.f32.xlu0 %v2558_v44 }
 0x25a   : > { %v687_v46 = vpop.f32.mrf.mxu2 }
 0x25b   : > { %v2563_v47 = vmul.f32 0.078125, %v687_v46 }
 0x25d   : > { %v2569_v48 = vsel %vm2475_vm11, %v2563_v47, -inf }
 0x25e   : > { %791 = vmax.xlane.f32.xlu1 %v2569_v48 }
 0x262   : > { %v689_v50 = vpop.f32.mrf.mxu2 }
 0x263   : > { %v2576_v51 = vmul.f32 0.078125, %v689_v50  ;;  %v1043_v50 = vsel %vm749_vm8, 1, %v2177_v17 }
 0x265   : > { %v2582_v52 = vsel %vm2475_vm11, %v2576_v51, -inf }
 0x266   : > { %793 = vmax.xlane.f32.xlu2 %v2582_v52 }
 0x26a   : > { %1078 = vperm.xlu0 %1850, %v1039_v53   ;;  %v692_v61 = vpop.f32.mrf.mxu2 }
 0x26b   : > { %v2600_v2 = vmul.f32 0.078125, %v692_v61 }
 0x26d   : > { %v2605_v8 = vsel %vm2475_vm11, %v2600_v2, -inf }
 0x272   : > { %v694_v12 = vpop.f32.mrf.mxu2 }
 0x273   : > { %v2613_v18 = vmul.f32 0.078125, %v694_v12 }
 0x275   : > { %v2623_v30 = vsel %vm2475_vm11, %v2613_v18, -inf }
 0x277   : > { %1075 = vperm.xlu1 %1851, %v1038_v55   ;;  %v730_v55 = vld [vmem:[%s2432_s26 + $0x60] sm:$0xff] }
 0x278   : > { %vm746_vm9 = vcmp.gt.f32.partialorder %v730_v55, 0.5 }
 0x279   : > { %v1040_v61 = vsel %vm746_vm9, 1, %v2177_v17 }
 0x27a   : > { %v697_v24 = vpop.f32.mrf.mxu2 }
 0x27e   : > { %1072 = vperm.xlu2 %1849, %v1037_v60  }
 0x28b   : > { %v772_v62 = vpop.xlane.xlu0 %771 }
 0x28c   : > { %v803_v63 = vsub.f32 %v2483_v59, %v772_v62 }
 0x28e   : > { %v819_v0 = vmul.f32 1.442695, %v803_v63  ;;  %v732_v63 = vld [vmem:[%s2432_s26 + $0x70] sm:$0xff] }
 0x28f   : > { %vm748_vm10 = vcmp.gt.f32.partialorder %v732_v63, 0.5 }
 0x290   : > { %1852 = vpow2.f32 %v819_v0 }
 0x291   : > { %v776_v4 = vpop.xlane.xlu1 %775 }
 0x292   : > { %v805_v16 = vsub.f32 %v2490_v3, %v776_v4  ;;  %v2625_v3 = vmul.f32 0.078125, %v697_v24 }
 0x293   : > { %v774_v7 = vpop.xlane.xlu0 %773 }
 0x294   : > { %v804_v11 = vsub.f32 %v2497_v6, %v774_v7  ;;  %795 = vmax.xlane.f32.xlu0 %v2605_v8  ;;  %v823_v19 = vmul.f32 1.442695, %v805_v16  ;;  %v731_v6 = vld [vmem:[%s2432_s26 + $0x68] sm:$0xff]  ;;  %v2631_v36 = vsel %vm2475_vm11, %v2625_v3, -inf  ;;  %v1042_v7 = vsel %vm748_vm10, 1, %v2177_v17  ;;  %s2024_s26 = sshra.s32 %s1459_s17, 4  ;;  %s2025_s26 = int_to_ptr.hbm [resolvable:$true] %s2024_s26 }
 0x295   : > { %vm747_vm7 = vcmp.gt.f32.partialorder %v731_v6, 0.5  ;;  %s2026_s22 = scalar_lea.hbm %s2025_s26, 128  ;;  %p2031_p9 = scmp.lt.s32.totalorder %s2025_s26, %s3188_s5 }
 0x296   : > { %v2609_v13 = vpop.eup %1852  ;;  %v821_v59 = vmul.f32 1.442695, %v804_v11  ;;  %v1041_v37 = vsel %vm747_vm7, 1, %v2177_v17  ;;  %p2027_p4 = scmp.ne.s32.totalorder %s2025_s26, %s2026_s22  ;;  %p2032_p2 = scmp.lt.s32.totalorder %s2030_s1, %s2026_s22 }
 0x297   : > { %867 = vmatmul.f32.vlgmr.msra.gmra.mxu3 %v2609_v13 }
 0x298   : > { %1854 = vpow2.f32 %v821_v59  ;;  %p2028_p8 = pnand %p2027_p4, %p2297_p3  ;;  %p2033_p10 = por %p2032_p2, %p2031_p9 }
 0x299   : > { %v778_v20 = vpop.xlane.xlu1 %777  ;;  %1856 = vpow2.f32 %v823_v19 }
 0x29a   : > { %v806_v26 = vsub.f32 %v2504_v10, %v778_v20  ;;  %p2029_p11 = pneg %p2028_p8 }
 0x29c   : > { %v825_v32 = vmul.f32 1.442695, %v806_v26  ;;  %p2034_p12 = pnand %p2033_p10, %p2029_p11 }
 0x29e   : > { %v2615_v25 = vpop.eup %1854  ;;  %1858 = vpow2.f32 %v825_v32 }
 0x29f   : > { %870 = vmatmul.f32.gmra.mxu3 %v2615_v25  ;;  %v2634_v10 = vpop.eup %1856 }
 0x2a1   : > { %797 = vmax.xlane.f32.xlu1 %v2623_v30  ;;  %v780_v31 = vpop.xlane.xlu2 %779 }
 0x2a2   : > { %v807_v42 = vsub.f32 %v2511_v15, %v780_v31 }
 0x2a4   : > { %v827_v46 = vmul.f32 1.442695, %v807_v42  ;;  %v2641_v53 = vpop.eup %1858 }
 0x2a6   : > { %1860 = vpow2.f32 %v827_v46 }
 0x2a7   : > { %873 = vmatmul.f32.gmra.mxu3 %v2634_v10  ;;  %799 = vmax.xlane.f32.xlu2 %v2631_v36 }
 0x2a8   : > { %1084 = vperm.xlu0 %1850, %v1041_v37  }
 0x2a9   : > { %v782_v49 = vpop.xlane.xlu2 %781 }
 0x2aa   : > { %v808_v54 = vsub.f32 %v2520_v22, %v782_v49 }
 0x2ac   : > { %v829_v57 = vmul.f32 1.442695, %v808_v54  ;;  %v2646_v15 = vpop.eup %1860 }
 0x2ae   : > { %1862 = vpow2.f32 %v829_v57 }
 0x2af   : > { %876 = vmatmul.f32.gmra.mxu3 %v2641_v53 }
 0x2b0   : > { %1090 = vperm.xlu0 %1850, %v1043_v50  }
 0x2b1   : > { %v784_v60 = vpop.xlane.xlu0 %783 }
 0x2b2   : > { %v809_v62 = vsub.f32 %v2529_v28, %v784_v60 }
 0x2b4   : > { %v831_v0 = vmul.f32 1.442695, %v809_v62  ;;  %v2652_v22 = vpop.eup %1862 }
 0x2b6   : > { %1864 = vpow2.f32 %v831_v0 }
 0x2b7   : > { %879 = vmatmul.f32.gmra.mxu3 %v2646_v15 }
 0x2b9   : > { %v786_v4 = vpop.xlane.xlu1 %785 }
 0x2ba   : > { %1081 = vperm.xlu1 %1851, %v1040_v61   ;;  %v810_v11 = vsub.f32 %v2538_v34, %v786_v4 }
 0x2bc   : > { %v833_v12 = vmul.f32 1.442695, %v810_v11  ;;  %v2657_v16 = vpop.eup %1864 }
 0x2be   : > { %1866 = vpow2.f32 %v833_v12 }
 0x2bf   : > { %882 = vmatmul.f32.gmra.mxu3 %v2652_v22 }
 0x2c1   : > { %v788_v59 = vpop.xlane.xlu2 %787 }
 0x2c2   : > { %1087 = vperm.xlu1 %1851, %v1042_v7   ;;  %v811_v28 = vsub.f32 %v2547_v40, %v788_v59 }
 0x2c4   : > { %v835_v19 = vmul.f32 1.442695, %v811_v28  ;;  %v2661_v24 = vpop.eup %1866 }
 0x2c6   : > { %1868 = vpow2.f32 %v835_v19 }
 0x2c7   : > { %885 = vmatmul.f32.gmra.mxu3 %v2657_v16 }
 0x2c9   : > { %v790_v20 = vpop.xlane.xlu0 %789 }
 0x2ca   : > { %v812_v6 = vsub.f32 %v2558_v44, %v790_v20  ;;  %v699_v44 = vpop.f32.mrf.mxu2 }
 0x2cb   : > { %v717_v50 = vmul.f32 0.078125, %v699_v44 }
 0x2cc   : > { %v837_v34 = vmul.f32 1.442695, %v812_v6  ;;  %v2665_v31 = vpop.eup %1868 }
 0x2ce   : > { %1870 = vpow2.f32 %v837_v34 }
 0x2cf   : > { %888 = vmatmul.f32.gmra.mxu3 %v2661_v24 }
 0x2d1   : > { %v792_v26 = vpop.xlane.xlu1 %791 }
 0x2d2   : > { %v813_v32 = vsub.f32 %v2569_v48, %v792_v26  ;;  %v2678_v48 = vsel %vm2475_vm11, %v717_v50, -inf }
 0x2d4   : > { %v839_v37 = vmul.f32 1.442695, %v813_v32  ;;  %v2669_v38 = vpop.eup %1870 }
 0x2d6   : > { %1872 = vpow2.f32 %v839_v37 }
 0x2d7   : > { %891 = vmatmul.f32.gmra.mxu3 %v2665_v31 }
 0x2d9   : > { %v794_v40 = vpop.xlane.xlu2 %793 }
 0x2da   : > { %v814_v42 = vsub.f32 %v2582_v52, %v794_v40 }
 0x2dc   : > { %v841_v46 = vmul.f32 1.442695, %v814_v42  ;;  %v2673_v49 = vpop.eup %1872  ;;  %v1079_v55 = vpop.permute.xlu0 %1078 }
 0x2dd   : > { %vm1103_vm14 = vcmp.eq.s32.totalorder %v1079_v55, 1 }
 0x2de   : > { %1874 = vpow2.f32 %v841_v46 }
 0x2df   : > { %894 = vmatmul.f32.gmra.mxu3 %v2669_v38 }
 0x2e1   : > { %v1073_v63 = vpop.permute.xlu2 %1072 }
 0x2e2   : > { %vm1101_vm11 = vcmp.eq.s32.totalorder %v1073_v63, 1 }
 0x2e4   : > { %v2681_v54 = vpop.eup %1874 }
 0x2e7   : > { %897 = vmatmul.f32.gmra.mxu3 %v2673_v49 }
 0x2e9   : > { %v1076_v61 = vpop.permute.xlu1 %1075 }
 0x2ea   : > { %vm1102_vm15 = vcmp.eq.s32.totalorder %v1076_v61, 1 }
 0x2ec   : > { %801 = vmax.xlane.f32.xlu1 %v2678_v48 }
 0x2ef   : > { %900 = vmatmul.f32.gmra.mxu3 %v2681_v54 }
 0x307   : > { %v796_v52 = vpop.xlane.xlu0 %795 }
 0x308   : > { %v815_v57 = vsub.f32 %v2605_v8, %v796_v52 }
 0x30a   : > { %v843_v60 = vmul.f32 1.442695, %v815_v57  ;;  %v1118_v57 = vsel %vm1102_vm15, %v2563_v47, -inf }
 0x30c   : > { %1876 = vpow2.f32 %v843_v60 }
 0x312   : > { %v2685_v62 = vpop.eup %1876 }
 0x313   : > { %903 = vmatmul.f32.gmra.mxu3 %v2685_v62 }
 0x314   : > { %v798_v56 = vpop.xlane.xlu1 %797 }
 0x315   : > { %v816_v0 = vsub.f32 %v2623_v30, %v798_v56 }
 0x317   : > { %v845_v4 = vmul.f32 1.442695, %v816_v0 }
 0x319   : > { %1878 = vpow2.f32 %v845_v4 }
 0x31a   : > { %v868_v7 = vpop.f32.mrf.mxu3  ;;  %v800_v11 = vpop.xlane.xlu2 %799 }
 0x31b   : > { %1880 = vrcp.f32 %v868_v7  ;;  %v817_v12 = vsub.f32 %v2631_v36, %v800_v11  ;;  %v1085_v20 = vpop.permute.xlu0 %1084  ;;  %v2697_v36 = vsel %vm1101_vm11, %v2553_v43, -inf }
 0x31c   : > { %vm1105_vm12 = vcmp.eq.s32.totalorder %v1085_v20, 1  ;;  %v1129_v37 = vmax.f32 %v1125_v23, %v2697_v36 }
 0x31d   : > { %v847_v59 = vmul.f32 1.442695, %v817_v12  ;;  %v1121_v26 = vsel %vm1105_vm12, %v2613_v18, -inf  ;;  %v1119_v18 = vsel %vm1103_vm14, %v2576_v51, -inf }
 0x31e   : > { %v1133_v46 = vmax.f32 %v1129_v37, %v1121_v26 }
 0x31f   : > { %v2690_v8 = vpop.eup %1878  ;;  %1882 = vpow2.f32 %v847_v59 }
 0x320   : > { %906 = vmatmul.f32.gmra.mxu3 %v2690_v8 }
 0x321   : > { %v1881_v28 = vpop.eup %1880 }
 0x322   : > { %v871_v19 = vpop.f32.mrf.mxu3  ;;  %934 = vperm.xlu0 %1850, %v1881_v28  }
 0x323   : > { %1884 = vrcp.f32 %v871_v19  ;;  %v1091_v40 = vpop.permute.xlu0 %1090 }
 0x324   : > { %vm1107_vm0 = vcmp.eq.s32.totalorder %v1091_v40, 1 }
 0x325   : > { %v2693_v6 = vpop.eup %1882  ;;  %v1123_v23 = vsel %vm1107_vm0, %v717_v50, -inf }
 0x328   : > { %909 = vmatmul.f32.gmra.mxu3 %v2693_v6 }
 0x329   : > { %v1885_v30 = vpop.eup %1884 }
 0x32a   : > { %v874_v34 = vpop.f32.mrf.mxu3  ;;  %939 = vperm.xlu0 %1850, %v1885_v30  }
 0x32b   : > { %1886 = vrcp.f32 %v874_v34 }
 0x32c   : > { %v1082_v32 = vpop.permute.xlu1 %1081 }
 0x32d   : > { %vm1104_vm13 = vcmp.eq.s32.totalorder %v1082_v32, 1 }
 0x32e   : > { %v1120_v42 = vsel %vm1104_vm13, %v2600_v2, -inf  ;;  %v1131_v2 = vmax.f32 %v1127_v35, %v1119_v18 }
 0x32f   : > { %v1132_v43 = vmax.f32 %v2550_v41, %v1120_v42  ;;  %v1130_v41 = vmax.f32 %v1126_v29, %v1118_v57 }
 0x330   : > { %v1135_v61 = vmax.f32 %v1131_v2, %v1123_v23 }
 0x331   : > { %v1887_v44 = vpop.eup %1886  ;;  %v1136_v52 = vmax.f32 %v1132_v43, %v1133_v46 }
 0x332   : > { %v877_v60 = vpop.f32.mrf.mxu3  ;;  %944 = vperm.xlu0 %1850, %v1887_v44  }
 0x333   : > { %1888 = vrcp.f32 %v877_v60 }
 0x334   : > { %v1088_v63 = vpop.permute.xlu1 %1087 }
 0x335   : > { %vm1106_vm1 = vcmp.eq.s32.totalorder %v1088_v63, 1 }
 0x336   : > { %v1122_v55 = vsel %vm1106_vm1, %v2625_v3, -inf }
 0x337   : > { %v1134_v51 = vmax.f32 %v1130_v41, %v1122_v55 }
 0x339   : > { %v1889_v56 = vpop.eup %1888  ;;  %v1137_v47 = vmax.f32 %v1134_v51, %v1135_v61 }
 0x33a   : > { %v880_v0 = vpop.f32.mrf.mxu3  ;;  %949 = vperm.xlu2 %1849, %v1889_v56  }
 0x33b   : > { %v1138_v4 = vmax.f32 %v1136_v52, %v1137_v47  ;;  %1890 = vrcp.f32 %v880_v0 }
 0x33d   : > { %v1139_v50 = vrot.slane %v1138_v4, 4 }
 0x33f   : > { %v1140_v7 = vmax.f32 %v1138_v4, %v1139_v50 }
 0x341   : > { %v1891_v11 = vpop.eup %1890  ;;  %v1141_v12 = vrot.slane %v1140_v7, 2 }
 0x342   : > { %v883_v35 = vpop.f32.mrf.mxu3  ;;  %954 = vperm.xlu0 %1850, %v1891_v11  }
 0x343   : > { %v1142_v59 = vmax.f32 %v1140_v7, %v1141_v12  ;;  %1892 = vrcp.f32 %v883_v35 }
 0x345   : > { %v1143_v29 = vrot.slane %v1142_v59, 1 }
 0x347   : > { %v2715_v28 = vmax.f32 %v1142_v59, %v1143_v29 }
 0x349   : > { %v1893_v3 = vpop.eup %1892  ;;  %v1159_v19 = vsub.f32 %v1122_v55, %v2715_v28  ;;  %v1160_v20 = vsub.f32 %v1123_v23, %v2715_v28  ;;  %v1158_v34 = vsub.f32 %v1121_v26, %v2715_v28  ;;  %v1153_v32 = vsub.f32 %v2543_v39, %v2715_v28 }
 0x34a   : > { %v886_v30 = vpop.f32.mrf.mxu3  ;;  %959 = vperm.xlu0 %1850, %v1893_v3   ;;  %v1157_v46 = vsub.f32 %v1120_v42, %v2715_v28  ;;  %v1152_v43 = vsub.f32 %v2534_v33, %v2715_v28  ;;  %v1156_v44 = vsub.f32 %v1119_v18, %v2715_v28  ;;  %v1151_v52 = vsub.f32 %v2525_v27, %v2715_v28 }
 0x34b   : > { %1894 = vrcp.f32 %v886_v30  ;;  %v1191_v37 = vmul.f32 1.442695, %v1160_v20  ;;  %v1189_v40 = vmul.f32 1.442695, %v1159_v19  ;;  %v1187_v60 = vmul.f32 1.442695, %v1158_v34 }
 0x34c   : > { %v1150_v26 = vsub.f32 %v2516_v21, %v2715_v28  ;;  %v1149_v39 = vsub.f32 %v2507_v14, %v2715_v28  ;;  %v1148_v23 = vsub.f32 %v2500_v9, %v2715_v28  ;;  %v1147_v42 = vsub.f32 %v2486_v1, %v2715_v28 }
 0x34d   : > { %1896 = vpow2.f32 %v1191_v37  ;;  %v1185_v33 = vmul.f32 1.442695, %v1157_v46  ;;  %v1155_v18 = vsub.f32 %v1118_v57, %v2715_v28  ;;  %v1146_v27 = vsub.f32 %v2493_v5, %v2715_v28 }
 0x34e   : > { %1898 = vpow2.f32 %v1189_v40  ;;  %v1145_v21 = vsub.f32 %v2479_v58, %v2715_v28  ;;  %v1183_v14 = vmul.f32 1.442695, %v1156_v44  ;;  %v1154_v9 = vsub.f32 %v2697_v36, %v2715_v28 }
 0x34f   : > { %1900 = vpow2.f32 %v1187_v60  ;;  %v1181_v41 = vmul.f32 1.442695, %v1155_v18  ;;  %v1177_v55 = vmul.f32 1.442695, %v1153_v32  ;;  %v1175_v56 = vmul.f32 1.442695, %v1152_v43 }
 0x350   : > { %v1179_v5 = vmul.f32 1.442695, %v1154_v9  ;;  %v1173_v0 = vmul.f32 1.442695, %v1151_v52  ;;  %v1171_v4 = vmul.f32 1.442695, %v1150_v26 }
 0x351   : > { %v1895_v63 = vpop.eup %1894  ;;  %v1169_v7 = vmul.f32 1.442695, %v1149_v39  ;;  %v1167_v19 = vmul.f32 1.442695, %v1148_v23  ;;  %v1165_v30 = vmul.f32 1.442695, %v1147_v42 }
 0x352   : > { %v889_v2 = vpop.f32.mrf.mxu3  ;;  %964 = vperm.xlu1 %1851, %v1895_v63   ;;  %v1163_v34 = vmul.f32 1.442695, %v1146_v27  ;;  %v1161_v40 = vmul.f32 1.442695, %v1145_v21 }
 0x353   : > { %1902 = vrcp.f32 %v889_v2  ;;  %v2743_v1 = vpop.eup %1896 }
 0x354   : > { %1904 = vpow2.f32 %v1185_v33  ;;  %1193 = vmatpush.msrb.mxu0 %v2743_v1  ;;  %v2746_v57 = vpop.eup %1898 }
 0x355   : > { %1906 = vpow2.f32 %v1183_v14  ;;  %v2749_v58 = vpop.eup %1900 }
 0x356   : > { %1194 = vmatpush.msrb.mxu0 %v2746_v57  ;;  %1908 = vpow2.f32 %v1181_v41 }
 0x357   : > { %1910 = vpow2.f32 %v1179_v5 }
 0x358   : > { %1195 = vmatpush.msrb.mxu0 %v2749_v58 }
 0x359   : > { %v1903_v61 = vpop.eup %1902 }
 0x35a   : > { %v2752_v36 = vpop.eup %1904  ;;  %v892_v51 = vpop.f32.mrf.mxu3  ;;  %969 = vperm.xlu0 %1850, %v1903_v61  }
 0x35b   : > { %1912 = vrcp.f32 %v892_v51  ;;  %1196 = vmatpush.msrb.mxu0 %v2752_v36  ;;  %v2755_v47 = vpop.eup %1906 }
 0x35c   : > { %1914 = vpow2.f32 %v1177_v55  ;;  %v2758_v50 = vpop.eup %1908 }
 0x35d   : > { %1197 = vmatpush.msrb.mxu0 %v2755_v47  ;;  %1916 = vpow2.f32 %v1175_v56  ;;  %v2761_v12 = vpop.eup %1910 }
 0x35e   : > { %1918 = vpow2.f32 %v1173_v0 }
 0x35f   : > { %1198 = vmatpush.msrb.mxu0 %v2758_v50  ;;  %v802_v11 = vpop.xlane.xlu1 %801  ;;  %1920 = vpow2.f32 %v1171_v4 }
 0x360   : > { %v818_v35 = vsub.f32 %v2678_v48, %v802_v11  ;;  %1922 = vpow2.f32 %v1169_v7 }
 0x361   : > { %v1913_v59 = vpop.eup %1912  ;;  %1199 = vmatpush.msrb.mxu0 %v2761_v12 }
 0x362   : > { %v2765_v29 = vpop.eup %1914  ;;  %v849_v28 = vmul.f32 1.442695, %v818_v35  ;;  %v895_v3 = vpop.f32.mrf.mxu3  ;;  %974 = vperm.xlu2 %1849, %v1913_v59  }
 0x363   : > { %1924 = vrcp.f32 %v895_v3  ;;  %1200 = vmatpush.msrb.mxu0 %v2765_v29  ;;  %v2768_v20 = vpop.eup %1916 }
 0x364   : > { %1926 = vpow2.f32 %v849_v28  ;;  %v2771_v48 = vpop.eup %1918 }
 0x365   : > { %1201 = vmatpush.msrb.mxu0 %v2768_v20  ;;  %1928 = vpow2.f32 %v1167_v19  ;;  %v2773_v32 = vpop.eup %1920 }
 0x366   : > { %v2776_v37 = vpop.eup %1922  ;;  %1930 = vpow2.f32 %v1165_v30 }
 0x367   : > { %1202 = vmatpush.msrb.mxu0 %v2771_v48  ;;  %1932 = vpow2.f32 %v1163_v34 }
 0x369   : > { %v1925_v46 = vpop.eup %1924  ;;  %1203 = vmatpush.msrb.mxu0 %v2773_v32 }
 0x36a   : > { %v2779_v43 = vpop.eup %1926  ;;  %v898_v44 = vpop.f32.mrf.mxu3  ;;  %979 = vperm.xlu0 %1850, %v1925_v46  }
 0x36b   : > { %1934 = vrcp.f32 %v898_v44  ;;  %1204 = vmatpush.msrb.mxu0 %v2776_v37  ;;  %912 = vmatmul.f32.gmra.mxu3 %v2779_v43  ;;  %v1929_v52 = vpop.eup %1928 }
 0x36c   : > { %1936 = vpow2.f32 %v1161_v40  ;;  %v2783_v60 = vpop.eup %1930 }
 0x36d   : > { %1205 = vmatpush.msrb.mxu0 %v1929_v52  ;;  %v1933_v26 = vpop.eup %1932 }
 0x36f   : > { %1206 = vmatpush.msrb.mxu0 %v2783_v60 }
 0x371   : > { %v1935_v39 = vpop.eup %1934  ;;  %1207 = vmatpush.msrb.mxu0 %v1933_v26 }
 0x372   : > { %v1937_v23 = vpop.eup %1936  ;;  %v901_v42 = vpop.f32.mrf.mxu3  ;;  %984 = vperm.xlu2 %1849, %v1935_v39  }
 0x373   : > { %1938 = vrcp.f32 %v901_v42  ;;  %1208 = vmatpush.msrb.mxu0 %v1937_v23 }
 0x374   : > { %1209 = vmatmul.f32.vlgmr.msrb.gmra.mxu0 %v2178_v45 }
 0x379   : > { %v1939_v33 = vpop.eup %1938 }
 0x37a   : > { %989 = vperm.xlu0 %1850, %v1939_v33  }
 0x394   : > { %v935_v9 = vpop.permute.xlu0 %934  ;;  %v950_v55 = vpop.permute.xlu2 %949 }
 0x395   : > { %v1012_v19 = vmul.f32 %v2609_v13, %v935_v9  ;;  %v1015_v42 = vmul.f32 %v2641_v53, %v950_v55 }
 0x396   : > { %v904_v18 = vpop.f32.mrf.mxu3 }
 0x397   : > { %1940 = vrcp.f32 %v904_v18 }
 0x39c   : > { %v940_v41 = vpop.permute.xlu0 %939 }
 0x39d   : > { %v1941_v27 = vpop.eup %1940  ;;  %v1013_v30 = vmul.f32 %v2615_v25, %v940_v41 }
 0x39e   : > { %994 = vperm.xlu2 %1849, %v1941_v27  }
 0x3a3   : > { %v907_v63 = vpop.f32.mrf.mxu3 }
 0x3a4   : > { %1942 = vrcp.f32 %v907_v63  ;;  %v945_v5 = vpop.permute.xlu0 %944 }
 0x3aa   : > { %v1943_v21 = vpop.eup %1942 }
 0x3ab   : > { %v910_v2 = vpop.f32.mrf.mxu3  ;;  %999 = vperm.xlu1 %1851, %v1943_v21  }
 0x3ac   : > { %1944 = vrcp.f32 %v910_v2 }
 0x3b2   : > { %v1945_v14 = vpop.eup %1944 }
 0x3b3   : > { %1004 = vperm.xlu0 %1850, %v1945_v14  }
 0x3b4   : > { %v955_v61 = vpop.permute.xlu0 %954 }
 0x3bc   : > { %v975_v45 = vpop.permute.xlu2 %974  ;;  %v960_v51 = vpop.permute.xlu0 %959 }
 0x3c4   : > { %v965_v33 = vpop.permute.xlu1 %964 }
 0x3cc   : > { %v985_v0 = vpop.permute.xlu2 %984  ;;  %v970_v7 = vpop.permute.xlu0 %969 }
 0x3dc   : > { %v980_v34 = vpop.permute.xlu0 %979 }
 0x3dd   : > { %v1021_v27 = vmul.f32 %v2669_v38, %v980_v34 }
 0x3ec   : > { %v990_v21 = vpop.permute.xlu0 %989 }
 0x3ee   : > { %v913_v56 = vpop.f32.mrf.mxu3 }
 0x3ef   : > { %1946 = vrcp.f32 %v913_v56 }
 0x3f1   : > { %v1210_v4 = vpop.f32.mrf.mxu0 }
 0x3f2   : > { %1948 = vrcp.f32 %v1210_v4 }
 0x3f5   : > { %v1947_v11 = vpop.eup %1946 }
 0x3f6   : > { %1009 = vperm.xlu2 %1849, %v1947_v11  }
 0x3f8   : > { %v1949_v35 = vpop.eup %1948  ;;  %v995_v59 = vpop.permute.xlu2 %994 }
 0x3f9   : > { %v2787_v28 = vperm.slane %v1949_v35, 0  ;;  %v1024_v3 = vmul.f32 %v2685_v62, %v995_v59  ;;  %v1016_v62 = vmul.f32 %v2646_v15, %v955_v61 }
 0x3fb   : > { %v1227_v40 = vmul.f32 %v2752_v36, %v2787_v28  ;;  %v1216_v46 = vmul.f32 %v1933_v26, %v2787_v28  ;;  %v1215_v44 = vmul.f32 %v1937_v23, %v2787_v28  ;;  %v1219_v39 = vmul.f32 %v2776_v37, %v2787_v28 }
 0x3fc   : > { %v1218_v13 = vmul.f32 %v1929_v52, %v2787_v28  ;;  %v1222_v25 = vmul.f32 %v2768_v20, %v2787_v28  ;;  %v1221_v23 = vmul.f32 %v2771_v48, %v2787_v28  ;;  %v1019_v37 = vmul.f32 %v2661_v24, %v970_v7 }
 0x3fd   : > { %v2803_v18 = vmul.f32 %v1227_v40, %v1024_v3  ;;  %v2805_v36 = vmul.f32 %v1216_v46, %v1013_v30  ;;  %v2807_v26 = vmul.f32 %v1215_v44, %v1012_v19  ;;  %v2812_v53 = vmul.f32 %v1219_v39, %v1016_v62 }
 0x3fe   : > { %v1225_v15 = vmul.f32 %v2758_v50, %v2787_v28  ;;  %v1018_v52 = vmul.f32 %v2657_v16, %v965_v33  ;;  %v2824_v24 = vmul.f32 %v1218_v13, %v1015_v42  ;;  %v1224_v50 = vmul.f32 %v2761_v12, %v2787_v28 }
 0x3ff   : > { %1392 = vst [vmem:[%s2818_s11 + $0x60] sm:$0xff] %v2803_v18  ;;  %1249 = vmax.xlane.f32.xlu0 %v2805_v36  ;;  %1247 = vmax.xlane.f32.xlu1 %v2807_v26  ;;  %v1022_v16 = vmul.f32 %v2673_v49, %v985_v0  ;;  %v2831_v20 = vmul.f32 %v1222_v25, %v1019_v37 }
 0x400   : > { %1381 = vst [vmem:[%s2818_s11 + $0x8] sm:$0xff] %v2805_v36  ;;  %v1217_v48 = vmul.f32 %v2783_v60, %v2787_v28  ;;  %v2838_v63 = vmul.f32 %v1221_v23, %v1018_v52  ;;  %v1220_v12 = vmul.f32 %v2773_v32, %v2787_v28  ;;  %v1014_v49 = vmul.f32 %v2634_v10, %v945_v5 }
 0x401   : > { %1380 = vst [vmem:[%s2818_s11] sm:$0xff] %v2807_v26  ;;  %v2845_v2 = vmul.f32 %v1225_v15, %v1022_v16  ;;  %v1223_v38 = vmul.f32 %v2765_v29, %v2787_v28  ;;  %v1017_v60 = vmul.f32 %v2652_v22, %v960_v51  ;;  %v2852_v14 = vmul.f32 %v1224_v50, %v1021_v27 }
 0x402   : > { %1384 = vst [vmem:[%s2818_s11 + $0x20] sm:$0xff] %v2812_v53  ;;  %v1226_v10 = vmul.f32 %v2755_v47, %v2787_v28  ;;  %v1020_v32 = vmul.f32 %v2665_v31, %v975_v45  ;;  %v2859_v9 = vmul.f32 %v1217_v48, %v1014_v49  ;;  %v1023_v29 = vmul.f32 %v2681_v54, %v990_v21 }
 0x403   : > { %1383 = vst [vmem:[%s2818_s11 + $0x18] sm:$0xff] %v2824_v24  ;;  %v2864_v22 = vmul.f32 %v1220_v12, %v1017_v60  ;;  %v1228_v47 = vmul.f32 %v2749_v58, %v2787_v28  ;;  %v1229_v58 = vmul.f32 %v2746_v57, %v2787_v28 }
 0x404   : > { %1387 = vst [vmem:[%s2818_s11 + $0x38] sm:$0xff] %v2831_v20  ;;  %v2868_v41 = vmul.f32 %v1223_v38, %v1020_v32  ;;  %v2874_v31 = vmul.f32 %v1226_v10, %v1023_v29 }
 0x405   : > { %1386 = vst [vmem:[%s2818_s11 + $0x30] sm:$0xff] %v2838_v63 }
 0x406   : > { %1390 = vst [vmem:[%s2818_s11 + $0x50] sm:$0xff] %v2845_v2 }
 0x407   : > { %1255 = vmax.xlane.f32.xlu0 %v2812_v53  ;;  %1253 = vmax.xlane.f32.xlu1 %v2824_v24  ;;  %1389 = vst [vmem:[%s2818_s11 + $0x48] sm:$0xff] %v2852_v14 }
 0x408   : > { %1382 = vst [vmem:[%s2818_s11 + $0x10] sm:$0xff] %v2859_v9 }
 0x409   : > { %1385 = vst [vmem:[%s2818_s11 + $0x28] sm:$0xff] %v2864_v22 }
 0x40a   : > { %1388 = vst [vmem:[%s2818_s11 + $0x40] sm:$0xff] %v2868_v41 }
 0x40b   : > { %1391 = vst [vmem:[%s2818_s11 + $0x58] sm:$0xff] %v2874_v31 }
 0x40f   : > { %1261 = vmax.xlane.f32.xlu0 %v2831_v20  ;;  %1259 = vmax.xlane.f32.xlu1 %v2838_v63 }
 0x417   : > { %1267 = vmax.xlane.f32.xlu0 %v2845_v2  ;;  %1265 = vmax.xlane.f32.xlu1 %v2852_v14 }
 0x41d   : > { %v1000_v54 = vpop.permute.xlu1 %999 }
 0x41e   : > { %v1025_v5 = vmul.f32 %v2690_v8, %v1000_v54 }
 0x41f   : > { %1271 = vmax.xlane.f32.xlu1 %v2803_v18  ;;  %1251 = vmax.xlane.f32.xlu2 %v2859_v9 }
 0x420   : > { %v2893_v55 = vmul.f32 %v1228_v47, %v1025_v5 }
 0x422   : > { %1393 = vst [vmem:[%s2818_s11 + $0x68] sm:$0xff] %v2893_v55  ;;  %1273 = vmax.xlane.f32.xlu0 %v2893_v55 }
 0x425   : > { %v1005_v61 = vpop.permute.xlu0 %1004 }
 0x426   : > { %v1026_v45 = vmul.f32 %v2693_v6, %v1005_v61  ;;  %v1230_v6 = vmul.f32 %v2743_v1, %v2787_v28 }
 0x427   : > { %1257 = vmax.xlane.f32.xlu2 %v2864_v22 }
 0x428   : > { %v2902_v8 = vmul.f32 %v1229_v58, %v1026_v45 }
 0x42a   : > { %1394 = vst [vmem:[%s2818_s11 + $0x70] sm:$0xff] %v2902_v8 }
 0x42f   : > { %1263 = vmax.xlane.f32.xlu2 %v2868_v41 }
 0x437   : > { %1269 = vmax.xlane.f32.xlu2 %v2874_v31 }
 0x43f   : > { %1275 = vmax.xlane.f32.xlu2 %v2902_v8 }
 0x450   : > { %v1010_v51 = vpop.permute.xlu2 %1009 }
 0x451   : > { %v1027_v57 = vmul.f32 %v2779_v43, %v1010_v51 }
 0x453   : > { %v2912_v56 = vmul.f32 %v1230_v6, %v1027_v57 }
 0x455   : > { %1395 = vst [vmem:[%s2818_s11 + $0x78] sm:$0xff] %v2912_v56  ;;  %1277 = vmax.xlane.f32.xlu1 %v2912_v56 }
 0x456   : > { %2037 = shalt.err (!%p2034_p12)
}
 0x457   : > { %s2179_s11 = smov 128   ;;  %s2180_s16 = smov 8   ;;  %v1282_v1 = vmax.f32 %v2824_v24, %v2831_v20 }
 0x458   : > { %1777 = dma.vmem_to_hbm [thread:$0]  (%p2297_p3), %s1457_s10, 2048, %s1459_s17, %s1429_s15, %s2179_s11, %s2179_s11, %s2180_s16  }
 0x459   : > { %s1506_s2 = scalar_lea.hbm %s3191_s8, %s2918_s24  ;;  %s1507_s1 = sshll.u32 %s2374_s13, 4  ;;  %s1508_s1 = int_to_ptr.vmem [resolvable:$true] %s1507_s1 }
 0x45a   : > { %s1509_s3 = sshll.u32 %s1506_s2, 4  ;;  %s1444_s26 = scalar_lea.sflag [#allocation12], %s2331_s0  ;;  %s1510_s3 = int_to_ptr.hbm [resolvable:$true] %s1509_s3 }
 0x45b   : > { %s2052_s22 = sshra.s32 %s1510_s3, 4  ;;  %s2058_s15 = scalar_lea.hbm %s3191_s8, 256  ;;  %s2053_s22 = int_to_ptr.hbm [resolvable:$true] %s2052_s22 }
 0x45c   : > { %s2054_s23 = scalar_lea.hbm %s2053_s22, 128  ;;  %p2059_p7 = scmp.lt.s32.totalorder %s2053_s22, %s3191_s8 }
 0x45d   : > { %p2055_p13 = scmp.ne.s32.totalorder %s2053_s22, %s2054_s23  ;;  %p2060_p1 = scmp.lt.s32.totalorder %s2058_s15, %s2054_s23 }
 0x45f   : > { %p2056_p0 = pnand %p2055_p13, %p2297_p3  ;;  %p2061_p4 = por %p2060_p1, %p2059_p7 }
 0x461   : > { %p2057_p5 = pneg %p2056_p0 }
 0x463   : > { %p2062_p8 = pnand %p2061_p4, %p2057_p5 }
 0x465   : > { %2065 = shalt.err (!%p2062_p8)
}
 0x466   : > { %1780 = dma.vmem_to_hbm [thread:$0]  (%p2297_p3), %s1508_s1, 2048, %s1510_s3, %s1444_s26, %s2179_s11, %s2179_s11, %s2180_s16   ;;  %v1279_v43 = vmax.f32 %v2807_v26, %v2812_v53  ;;  %v1281_v0 = vmax.f32 %v2859_v9, %v2838_v63  ;;  %v1280_v4 = vmax.f32 %v2805_v36, %v2864_v22  ;;  %v1286_v7 = vmax.f32 %v1282_v1, %v2874_v31 }
 0x467   : > { %vm1301_vm4 = vcmp.gt.f32.partialorder %v2805_v36, 0.05  ;;  %vm1300_vm6 = vcmp.gt.f32.partialorder %v2807_v26, 0.05  ;;  %vm1304_vm15 = vcmp.gt.f32.partialorder %v2812_v53, 0.05  ;;  %s1489_s23 = scalar_lea.hbm %s3190_s7, %s2918_s24 }
 0x468   : > { %v1285_v11 = vmax.f32 %v1281_v0, %v2845_v2  ;;  %v1284_v35 = vmax.f32 %v1280_v4, %v2852_v14  ;;  %v1283_v59 = vmax.f32 %v1279_v43, %v2868_v41  ;;  %v1290_v28 = vmax.f32 %v1286_v7, %v2912_v56  ;;  %s1735_s21 = sshll.u32 %s2331_s0, 5  ;;  %s1760_s18 = sshll.u32 %s2247_s9, 5 }
 0x469   : > { %s3051_s0 = scalar_lea.vmem [#allocation8], %s1735_s21  ;;  %s1472_s3 = scalar_lea.hbm %s3189_s6, %s1760_s18 }
 0x46a   : > { %v1289_v3 = vmax.f32 %v1285_v11, %v2902_v8  ;;  %v1288_v19 = vmax.f32 %v1284_v35, %v2893_v55  ;;  %v1287_v30 = vmax.f32 %v1283_v59, %v2803_v18  ;;  %s1473_s10 = sshll.u32 %s3051_s0, 4  ;;  %s1433_s17 = sand.u32 1, %s2247_s9   ;;  %s1474_s10 = int_to_ptr.vmem [resolvable:$true] %s1473_s10 }
 0x46b   : > { %s1475_s15 = sshll.u32 %s1472_s3, 4  ;;  %s3120_s20 = sshll.u32 %s1489_s23, 4  ;;  %s1476_s15 = int_to_ptr.hbm [resolvable:$true] %s1475_s15  ;;  %s1493_s20 = int_to_ptr.hbm [resolvable:$true] %s3120_s20 }
 0x46c   : > { %v1292_v34 = vmax.f32 %v1289_v3, %v1290_v28  ;;  %v1291_v40 = vmax.f32 %v1287_v30, %v1288_v19  ;;  %s1490_s13 = sshll.u32 %s2411_s14, 4  ;;  %s3128_s24 = scalar_lea.sflag [#allocation9], %s1433_s17  ;;  %s3125_s13 = int_to_ptr.vmem [resolvable:$true] %s1490_s13 }
 0x46d   : > { %s2080_s21 = sshra.s32 %s1476_s15, 4  ;;  %s2086_s2 = scalar_lea.hbm %s3189_s6, 64  ;;  %s2081_s21 = int_to_ptr.hbm [resolvable:$true] %s2080_s21 }
 0x46e   : > { %v1293_v46 = vmax.f32 %v1291_v40, %v1292_v34  ;;  %s2082_s9 = scalar_lea.hbm %s2081_s21, 32  ;;  %p2087_p10 = scmp.lt.s32.totalorder %s2081_s21, %s3189_s6 }
 0x46f   : > { %p2083_p11 = scmp.ne.s32.totalorder %s2081_s21, %s2082_s9  ;;  %p2088_p12 = scmp.lt.s32.totalorder %s2086_s2, %s2082_s9 }
 0x470   : > { %v1294_v44 = vrot.slane %v1293_v46, 4 }
 0x471   : > { %p2084_p9 = pnand %p2083_p11, %p2297_p3  ;;  %p2089_p13 = por %p2088_p12, %p2087_p10 }
 0x472   : > { %v1295_v39 = vmax.f32 %v1293_v46, %v1294_v44  ;;  %v1250_v42 = vpop.xlane.xlu0 %1249  ;;  %v1248_v62 = vpop.xlane.xlu1 %1247 }
 0x473   : > { %vm1317_vm2 = vcmp.eq.f32.partialorder %v2805_v36, %v1250_v42  ;;  %vm1316_vm3 = vcmp.eq.f32.partialorder %v2807_v26, %v1248_v62  ;;  %p2085_p2 = pneg %p2084_p9 }
 0x474   : > { %v1296_v33 = vrot.slane %v1295_v39, 2  ;;  %vm1333_vm5 = vmand %vm1301_vm4, %vm1317_vm2  ;;  %vm1303_vm2 = vcmp.gt.f32.partialorder %v2824_v24, 0.05 }
 0x475   : > { %vm1332_vm7 = vmand %vm1300_vm6, %vm1316_vm3  ;;  %p2090_p0 = pnand %p2089_p13, %p2085_p2 }
 0x476   : > { %v1297_v13 = vmax.f32 %v1295_v39, %v1296_v33 }
 0x478   : > { %v1298_v25 = vrot.slane %v1297_v13, 1 }
 0x47a   : > { %v1256_v23 = vpop.xlane.xlu0 %1255  ;;  %v1254_v37 = vpop.xlane.xlu1 %1253  ;;  %v2975_v15 = vmax.f32 %v1297_v13, %v1298_v25 }
 0x47b   : > { %vm1320_vm12 = vcmp.eq.f32.partialorder %v2812_v53, %v1256_v23  ;;  %vm1319_vm13 = vcmp.eq.f32.partialorder %v2824_v24, %v1254_v37 }
 0x47c   : > { %vm1349_vm8 = vcmp.eq.f32.partialorder %v2805_v36, %v2975_v15  ;;  %vm1348_vm10 = vcmp.eq.f32.partialorder %v2807_v26, %v2975_v15  ;;  %vm3000_vm1 = vmand %vm1304_vm15, %vm1320_vm12  ;;  %v3217_v36 = vmov 0  ;;  %vm1355_vm15 = vcmp.eq.f32.partialorder %v2831_v20, %v2975_v15 }
 0x47d   : > { %vm2982_vm9 = vmand %vm1333_vm5, %vm1349_vm8  ;;  %v3218_v36 = vsel %vm3000_vm1, 4294967295, %v3217_v36  ;;  %vm1307_vm5 = vcmp.gt.f32.partialorder %v2831_v20, 0.05  ;;  %vm1351_vm8 = vcmp.eq.f32.partialorder %v2824_v24, %v2975_v15 }
 0x47e   : > { %vm2988_vm11 = vmand %vm1332_vm7, %vm1348_vm10  ;;  %vm1306_vm7 = vcmp.gt.f32.partialorder %v2838_v63, 0.05 }
 0x47f   : > { %vm1335_vm4 = vmand %vm1303_vm2, %vm1319_vm13  ;;  %vm1354_vm13 = vcmp.eq.f32.partialorder %v2838_v63, %v2975_v15  ;;  %vm1302_vm2 = vcmp.gt.f32.partialorder %v2859_v9, 0.05 }
 0x480   : > { %vm1367_vm12 = vmand %vm1335_vm4, %vm1351_vm8  ;;  %vm1350_vm4 = vcmp.eq.f32.partialorder %v2859_v9, %v2975_v15  ;;  %vm1352_vm8 = vcmp.eq.f32.partialorder %v2812_v53, %v2975_v15 }
 0x482   : > { %v1262_v16 = vpop.xlane.xlu0 %1261  ;;  %v1260_v48 = vpop.xlane.xlu1 %1259 }
 0x483   : > { %vm1323_vm0 = vcmp.eq.f32.partialorder %v2831_v20, %v1262_v16  ;;  %vm1322_vm3 = vcmp.eq.f32.partialorder %v2838_v63, %v1260_v48 }
 0x484   : > { %vm1339_vm6 = vmand %vm1307_vm5, %vm1323_vm0 }
 0x485   : > { %vm1338_vm10 = vmand %vm1306_vm7, %vm1322_vm3 }
 0x486   : > { %vm3013_vm1 = vmand %vm1339_vm6, %vm1355_vm15 }
 0x487   : > { %vm3019_vm0 = vmand %vm1338_vm10, %vm1354_vm13 }
 0x488   : > { %vm3223_vm6 = vmpackc.low %vm2982_vm9, %vm2988_vm11  ;;  %vm1305_vm9 = vcmp.gt.f32.partialorder %v2864_v22, 0.05 }
 0x489   : > { %v1398_v24 = vsel %vm3223_vm6, 16711935, %v2177_v17  ;;  %vm1308_vm6 = vcmp.gt.f32.partialorder %v2868_v41, 0.05 }
 0x48a   : > { %v1268_v10 = vpop.xlane.xlu0 %1267 }
 0x492   : > { %v1252_v26 = vpop.xlane.xlu2 %1251 }
 0x493   : > { %vm1318_vm14 = vcmp.eq.f32.partialorder %v2859_v9, %v1252_v26  ;;  %v1266_v9 = vpop.xlane.xlu1 %1265 }
 0x494   : > { %vm1334_vm3 = vmand %vm1302_vm2, %vm1318_vm14  ;;  %vm3224_vm14 = vnez %v3218_v36  ;;  %vm1353_vm2 = vcmp.eq.f32.partialorder %v2864_v22, %v2975_v15 }
 0x495   : > { %vm1366_vm5 = vmand %vm1334_vm3, %vm1350_vm4  ;;  %vm1326_vm4 = vcmp.eq.f32.partialorder %v2845_v2, %v1268_v10  ;;  %v1274_v5 = vpop.xlane.xlu0 %1273 }
 0x496   : > { %vm1397_vm7 = vmpackc.low %vm1367_vm12, %vm1366_vm5 }
 0x497   : > { %v1399_v20 = vsel %vm1397_vm7, 16711935, %v2177_v17  ;;  %vm3038_vm10 = vmand %vm3224_vm14, %vm1352_vm8  ;;  %vm1325_vm7 = vcmp.eq.f32.partialorder %v2852_v14, %v1266_v9  ;;  %vm1310_vm8 = vcmp.gt.f32.partialorder %v2845_v2, 0.05 }
 0x498   : > { %v1400_v49 = vpack.c.b8 %v1399_v20, %v1398_v24  ;;  %vm1403_vm12 = vmpackc.low %vm3013_vm1, %vm3019_vm0 }
 0x499   : > { %v1405_v38 = vsel %vm1403_vm12, 16711935, %v2177_v17  ;;  %vm1309_vm12 = vcmp.gt.f32.partialorder %v2852_v14, 0.05 }
 0x49a   : > { %v1258_v21 = vpop.xlane.xlu2 %1257  ;;  %vm1401_vm15 = vnez %v1400_v49 }
 0x49b   : > { %vm1321_vm11 = vcmp.eq.f32.partialorder %v2864_v22, %v1258_v21  ;;  %v1420_v53 = vsel %vm1401_vm15, 16843009, %v2177_v17  ;;  %vm1358_vm15 = vcmp.eq.f32.partialorder %v2845_v2, %v2975_v15  ;;  %v1272_v61 = vpop.xlane.xlu1 %1271 }
 0x49c   : > { %vm1337_vm13 = vmand %vm1305_vm9, %vm1321_vm11  ;;  %1424 = vst [vmem:[%s3051_s0] sm:$0xff] %v1420_v53  ;;  %vm1356_vm11 = vcmp.eq.f32.partialorder %v2868_v41, %v2975_v15 }
 0x49d   : > { %vm1369_vm3 = vmand %vm1337_vm13, %vm1353_vm2 }
 0x49e   : > { %vm1402_vm1 = vmpackc.low %vm1369_vm3, %vm3038_vm10  ;;  %vm1357_vm3 = vcmp.eq.f32.partialorder %v2852_v14, %v2975_v15 }
 0x49f   : > { %v1404_v60 = vsel %vm1402_vm1, 16711935, %v2177_v17  ;;  %vm1342_vm10 = vmand %vm1310_vm8, %vm1326_vm4  ;;  %vm1311_vm4 = vcmp.gt.f32.partialorder %v2874_v31, 0.05 }
 0x4a0   : > { %v1406_v32 = vpack.c.b8 %v1405_v38, %v1404_v60  ;;  %vm1341_vm9 = vmand %vm1309_vm12, %vm1325_vm7 }
 0x4a1   : > { %vm1374_vm2 = vmand %vm1342_vm10, %vm1358_vm15  ;;  %vm1329_vm10 = vcmp.eq.f32.partialorder %v2893_v55, %v1274_v5 }
 0x4a2   : > { %vm1407_vm0 = vnez %v1406_v32  ;;  %v1264_v29 = vpop.xlane.xlu2 %1263  ;;  %vm1373_vm1 = vmand %vm1341_vm9, %vm1357_vm3  ;;  %vm1328_vm9 = vcmp.eq.f32.partialorder %v2803_v18, %v1272_v61 }
 0x4a3   : > { %v1421_v22 = vsel %vm1407_vm0, 16843009, %v2177_v17  ;;  %vm1324_vm5 = vcmp.eq.f32.partialorder %v2868_v41, %v1264_v29 }
 0x4a4   : > { %1425 = vst [vmem:[%s3051_s0 + $0x8] sm:$0xff] %v1421_v22  ;;  %vm1340_vm14 = vmand %vm1308_vm6, %vm1324_vm5  ;;  %vm1359_vm6 = vcmp.eq.f32.partialorder %v2874_v31, %v2975_v15 }
 0x4a5   : > { %vm1372_vm13 = vmand %vm1340_vm14, %vm1356_vm11  ;;  %vm1313_vm11 = vcmp.gt.f32.partialorder %v2893_v55, 0.05 }
 0x4a6   : > { %vm1408_vm0 = vmpackc.low %vm1373_vm1, %vm1372_vm13  ;;  %vm1312_vm13 = vcmp.gt.f32.partialorder %v2803_v18, 0.05  ;;  %vm1361_vm1 = vcmp.eq.f32.partialorder %v2893_v55, %v2975_v15 }
 0x4a7   : > { %v1410_v2 = vsel %vm1408_vm0, 16711935, %v2177_v17  ;;  %vm1345_vm15 = vmand %vm1313_vm11, %vm1329_vm10  ;;  %vm1315_vm10 = vcmp.gt.f32.partialorder %v2912_v56, 0.05  ;;  %vm1363_vm11 = vcmp.eq.f32.partialorder %v2912_v56, %v2975_v15 }
 0x4a8   : > { %vm1344_vm3 = vmand %vm1312_vm13, %vm1328_vm9 }
 0x4a9   : > { %vm3087_vm0 = vmand %vm1345_vm15, %vm1361_vm1 }
 0x4aa   : > { %v1270_v54 = vpop.xlane.xlu2 %1269 }
 0x4ab   : > { %vm1327_vm5 = vcmp.eq.f32.partialorder %v2874_v31, %v1270_v54 }
 0x4ac   : > { %vm1343_vm7 = vmand %vm1311_vm4, %vm1327_vm5  ;;  %vm1314_vm4 = vcmp.gt.f32.partialorder %v2902_v8, 0.05  ;;  %vm1360_vm5 = vcmp.eq.f32.partialorder %v2803_v18, %v2975_v15 }
 0x4ad   : > { %vm1375_vm8 = vmand %vm1343_vm7, %vm1359_vm6 }
 0x4ae   : > { %vm1409_vm12 = vmpackc.low %vm1375_vm8, %vm1374_vm2 }
 0x4af   : > { %v1411_v41 = vsel %vm1409_vm12, 16711935, %v2177_v17  ;;  %vm3094_vm6 = vmand %vm1344_vm3, %vm1360_vm5  ;;  %vm1362_vm12 = vcmp.eq.f32.partialorder %v2902_v8, %v2975_v15 }
 0x4b0   : > { %v1412_v47 = vpack.c.b8 %v1411_v41, %v1410_v2  ;;  %vm1414_vm8 = vmpackc.low %vm3087_vm0, %vm3094_vm6 }
 0x4b1   : > { %v1416_v18 = vsel %vm1414_vm8, 16711935, %v2177_v17 }
 0x4b2   : > { %vm1413_vm14 = vnez %v1412_v47  ;;  %v1276_v45 = vpop.xlane.xlu2 %1275 }
 0x4b3   : > { %v1422_v14 = vsel %vm1413_vm14, 16843009, %v2177_v17  ;;  %vm1330_vm2 = vcmp.eq.f32.partialorder %v2902_v8, %v1276_v45 }
 0x4b4   : > { %1426 = vst [vmem:[%s3051_s0 + $0x10] sm:$0xff] %v1422_v14  ;;  %vm1346_vm7 = vmand %vm1314_vm4, %vm1330_vm2 }
 0x4b5   : > { %vm1378_vm14 = vmand %vm1346_vm7, %vm1362_vm12 }
 0x4c8   : > { %v1278_v55 = vpop.xlane.xlu1 %1277 }
 0x4c9   : > { %vm1331_vm9 = vcmp.eq.f32.partialorder %v2912_v56, %v1278_v55 }
 0x4ca   : > { %vm1347_vm15 = vmand %vm1315_vm10, %vm1331_vm9 }
 0x4cb   : > { %vm1379_vm13 = vmand %vm1347_vm15, %vm1363_vm11 }
 0x4cc   : > { %vm1415_vm2 = vmpackc.low %vm1379_vm13, %vm1378_vm14 }
 0x4cd   : > { %v1417_v8 = vsel %vm1415_vm2, 16711935, %v2177_v17 }
 0x4ce   : > { %v1418_v51 = vpack.c.b8 %v1417_v8, %v1416_v18 }
 0x4d0   : > { %vm1419_vm3 = vnez %v1418_v51 }
 0x4d1   : > { %v1423_v6 = vsel %vm1419_vm3, 16843009, %v2177_v17 }
 0x4d2   : > { %1427 = vst [vmem:[%s3051_s0 + $0x18] sm:$0xff] %v1423_v6 }
 0x4d3   : > { %2093 = shalt.err (!%p2090_p0)
}
 0x4d4   : > { %1778 = dma.vmem_to_hbm [thread:$0]  (%p2297_p3), %s1474_s10, 512, %s1476_s15, %s3128_s24, %s2179_s11, %s2179_s11, %s2180_s16  }
 0x4d5   : > { %s2108_s0 = sshra.s32 %s1493_s20, 4  ;;  %s2114_s17 = scalar_lea.hbm %s3190_s7, 256  ;;  %s2109_s0 = int_to_ptr.hbm [resolvable:$true] %s2108_s0 }
 0x4d6   : > { %s2110_s26 = scalar_lea.hbm %s2109_s0, 128  ;;  %p2115_p4 = scmp.lt.s32.totalorder %s2109_s0, %s3190_s7 }
 0x4d7   : > { %p2111_p5 = scmp.ne.s32.totalorder %s2109_s0, %s2110_s26  ;;  %p2116_p8 = scmp.lt.s32.totalorder %s2114_s17, %s2110_s26 }
 0x4d9   : > { %p2112_p7 = pnand %p2111_p5, %p2297_p3  ;;  %p2117_p11 = por %p2116_p8, %p2115_p4 }
 0x4db   : > { %p2113_p1 = pneg %p2112_p7 }
 0x4dd   : > { %p2118_p9 = pnand %p2117_p11, %p2113_p1 }
 0x4df   : > { %2121 = shalt.err (!%p2118_p9)
}
 0x4e0   : > { %1779 = dma.vmem_to_hbm [thread:$0]  (%p2297_p3), %s3125_s13, 2048, %s1493_s20, %s3128_s24, %s2179_s11, %s2179_s11, %s2180_s16  }
 0x4e1 PF: > { %s1524_s10 = sand.u32 1, %s2160_s27   ;;  %p3231_p2 = scmp.ge.s32.totalorder %s2172_s30, 2 }
 0x4e2   : > { %s1525_s15 = scalar_lea.sflag [#allocation4], %s1524_s10 }
 0x4e3   : > { %p1794_p10 = pnand %p3231_p2, %p2263_p6 }
 0x4e5   : > { %p1795_p12 = pneg %p1794_p10 }
 0x4e7   : > { %2147 = dma.done.wait (%p1795_p12), %s1525_s15, 2048  }
 0x4e8   : > { %2149 = vsyncadd (%p1795_p12), %s1525_s15, 4294965248  ;;  %s3232_s25 = sadd.s32 4294967294, %s2172_s30  }
 0x4e9   : > { %s1534_s18 = sand.u32 1, %s3232_s25  }
 0x4ea   : > { %s1535_s14 = scalar_lea.sflag [#allocation9], %s1534_s18 }
 0x4eb   : > { %2151 = dma.done.wait (%p1795_p12), %s1535_s14, 2560  }
 0x4ec   : > { %2153 = vsyncadd (%p1795_p12), %s1535_s14, 4294964736  ;;  %s1555_s2 = scalar_lea.sflag [#allocation12], %s1524_s10 }
 0x4ed   : > { %2155 = dma.done.wait (%p1795_p12), %s1555_s2, 2048  }
 0x4ee   : > { %2157 = vsyncadd (%p1795_p12), %s1555_s2, 4294965248  ;;  %s3233_s11 = sld [smem:[#allocation18_spill]]  ;;  %p29_p3 = scmp.ge.s32.totalorder %s2281_s19, 4  }
 0x4ef   : > { %s3234_s27 = smov %s2164_s28  ;;  %s3235_s28 = smov %s2168_s29 }
 0x4f0   : > { %s3237_s30 = smov %s2281_s19  ;;  %31 = sbr.rel (!%p29_p3) target bundleno = 15 (0xf), region = 148 }
 0x4f4   : > { %s3236_s29 = smov %s3233_s11 }
 0x4f5   :  { %1561 = vsyncpa [#allocation3], 1 }
 0x4f6   :  { %1563 = vsyncpa [#allocation3 + $0x1], 1 }
 0x4f7   :  { %1564 = vsyncpa [#allocation6], 1 }
 0x4f8   :  { %1566 = vsyncpa [#allocation6 + $0x1], 1 }
 0x4f9   :  { %1567 = vsyncpa [#allocation4], 1 }
 0x4fa   :  { %1569 = vsyncpa [#allocation4 + $0x1], 1 }
 0x4fb   :  { %1570 = vsyncpa [#allocation9], 1 }
 0x4fc   :  { %1572 = vsyncpa [#allocation9 + $0x1], 1 }
 0x4fd   :  { %1573 = vsyncpa [#allocation12], 1 }
 0x4fe   :  { %1575 = vsyncpa [#allocation12 + $0x1], 1 }

</bundles_post_ra>
